<compile_context>
chip_gen: v6e
topology: v6e:2x2x1
jax: 0.10.0
libtpu: 0.0.40
codegen_flags: <defaults>
</compile_context>

<pallas_src>
import functools

import jax
import jax.numpy as jnp
from jax.experimental import pallas as pl
from jax.experimental.pallas import tpu as pltpu


def _round_up(x, m):
    return (x + m - 1) // m * m


# ----------------------------------------------------------------------------
# Fused FFN kernel: one (batch, time-tile) step.
# ----------------------------------------------------------------------------
def _ffn_kernel(x_ref, m_ref, w1_ref, b1_ref, w2_ref, b2_ref, o_ref,
                *, K, Tt, pad):
    """
    x_ref : (Lp, Cin_p)        f32   padded input (channels-last), resident/batch
    m_ref : (Lp, 1)            f32   padded mask, resident/batch
    w1_ref: (K*Cin_p, F_p)     bf16  conv1 weights, taps fused on contraction
    b1_ref: (1, F_p)           f32
    w2_ref: (K*F_p, Cout_p)    bf16  conv2 weights, taps fused on contraction
    b2_ref: (1, Cout_p)        f32
    o_ref : (Tt, Cout_p)       bf16  output time-tile
    """
    base = pl.multiple_of(pl.program_id(1) * Tt, Tt)   # Tt is a multiple of 128
    Th = Tt + 2 * pad          # conv1 output rows needed (halo for conv2)
    Lx = Tt + 4 * pad          # conv1 input rows (halo for conv1 + conv2)

    # ---- pre-mask once per tile (f32 math, single cast to bf16) -------------
    m_slab = m_ref[pl.ds(base, Lx), :]                                  # (Lx, 1)
    xm = (x_ref[pl.ds(base, Lx), :] * m_slab).astype(jnp.bfloat16)      # (Lx, Cin_p)

    # ---- conv1: im2col over the K taps -> one deep-contraction MXU dot ------
    cat1 = jnp.concatenate([xm[k:k + Th, :] for k in range(K)], axis=1)
    h = jnp.dot(cat1, w1_ref[...], preferred_element_type=jnp.float32)  # (Th, F_p)
    h = jnp.maximum(h + b1_ref[...], 0.0)
    # dropout: identity at inference (p_dropout = 0.0).
    # fold conv2's input mask into the single f32->bf16 cast of the activation
    hm = (h * m_slab[pad:pad + Th, :]).astype(jnp.bfloat16)             # (Th, F_p)

    # ---- conv2: same fused-tap dot, bias, output mask ------------------------
    cat2 = jnp.concatenate([hm[k:k + Tt, :] for k in range(K)], axis=1)
    y = jnp.dot(cat2, w2_ref[...], preferred_element_type=jnp.float32)  # (Tt, Cout_p)
    y = (y + b2_ref[...]) * m_slab[2 * pad:2 * pad + Tt, :]
    o_ref[...] = y.astype(o_ref.dtype)


# ----------------------------------------------------------------------------
# Wrapper: layout / padding plumbing + the single pallas_call.
# ----------------------------------------------------------------------------
def ffn_forward(params, x, x_mask, *, time_tile=512):
    """x: (B, in_channels, T) f32; x_mask: (B, 1, T) f32 -> (B, out_channels, T)."""
    w1 = params["w1"]          # (F, Cin, K)  -- torch Conv1d weight layout
    b1 = params["b1"]          # (F,)
    w2 = params["w2"]          # (Cout, F, K)
    b2 = params["b2"]          # (Cout,)

    Fch, Cin, K = w1.shape
    Cout = w2.shape[0]
    assert K % 2 == 1, "odd kernel_size (as in GradTTS) gives 'same' padding"
    pad = K // 2
    B, _, T = x.shape

    cin_p = _round_up(Cin, 128)
    f_p = _round_up(Fch, 128)
    cout_p = _round_up(Cout, 128)

    # Time tile: big enough to amortize per-step pipeline overhead, multiple of
    # 128 (lane-dense output stores); keep nT >= 2 when B == 1 so both v7x TCs
    # get work.
    Tt = min(time_tile, _round_up(T, 128))
    if B == 1:
        Tt = min(Tt, _round_up(pl.cdiv(T, 2), 128))
    Tt = max(Tt, 128)
    nT = pl.cdiv(T, Tt)
    Lp = _round_up(nT * Tt + 4 * pad, 8)       # padded sequence length

    # channels-last, zero-pad time (2*pad on the left, rest right) and channels.
    # x / mask stay f32: the mask multiply is done in f32 in-kernel, with a
    # single bf16 cast feeding the MXU (exact for soft masks, no bf16 VALU).
    xt = jnp.pad(jnp.transpose(x, (0, 2, 1)).astype(jnp.float32),
                 ((0, 0), (2 * pad, Lp - 2 * pad - T), (0, cin_p - Cin)))
    mt = jnp.pad(jnp.transpose(x_mask, (0, 2, 1)).astype(jnp.float32),
                 ((0, 0), (2 * pad, Lp - 2 * pad - T), (0, 0)))

    # Fused-tap weights: (O, C, K) -> (K, C_p, O_p) -> (K*C_p, O_p) so the
    # contraction index is k*C_p + c, matching the im2col concat order.
    w1c = jnp.pad(jnp.transpose(w1, (2, 1, 0)),
                  ((0, 0), (0, cin_p - Cin), (0, f_p - Fch)))
    w1c = w1c.reshape(K * cin_p, f_p).astype(jnp.bfloat16)
    w2c = jnp.pad(jnp.transpose(w2, (2, 1, 0)),
                  ((0, 0), (0, f_p - Fch), (0, cout_p - Cout)))
    w2c = w2c.reshape(K * f_p, cout_p).astype(jnp.bfloat16)
    b1p = jnp.pad(b1, (0, f_p - Fch)).reshape(1, f_p).astype(jnp.float32)
    b2p = jnp.pad(b2, (0, cout_p - Cout)).reshape(1, cout_p).astype(jnp.float32)

    # Advisory cost estimate so XLA schedules neighbors around the custom call.
    flops = 2 * B * nT * Tt * K * (cin_p * f_p + f_p * cout_p)
    bytes_accessed = int(xt.size * 4 + mt.size * 4 + w1c.size * 2 + w2c.size * 2
                         + b1p.size * 4 + b2p.size * 4 + B * nT * Tt * cout_p * 2)
    cost = pl.CostEstimate(flops=int(flops), transcendentals=0,
                           bytes_accessed=bytes_accessed)

    # VMEM budget: double-buffered pipelined blocks + in-kernel temporaries,
    # with ~50% slack (v5e default scoped limit is only 16 MiB).
    Lx, Th = Tt + 4 * pad, Tt + 2 * pad
    vmem_est = (2 * (Lp * cin_p * 4 + Lp * 128 * 4 + Tt * cout_p * 2
                     + K * cin_p * f_p * 2 + K * f_p * cout_p * 2
                     + 128 * (f_p + cout_p) * 4)
                + Lx * cin_p * 6 + Th * f_p * 6
                + K * cin_p * Th * 2 + K * f_p * Tt * 2 + Tt * cout_p * 4)
    vmem_limit = int(min(max(vmem_est * 3 // 2, 32 * 1024 * 1024),
                         64 * 1024 * 1024))

    kernel = functools.partial(_ffn_kernel, K=K, Tt=Tt, pad=pad)
    out = pl.pallas_call(
        kernel,
        grid=(B, nT),
        in_specs=[
            pl.BlockSpec((None, Lp, cin_p), lambda b, t: (b, 0, 0)),     # x (resident)
            pl.BlockSpec((None, Lp, 1), lambda b, t: (b, 0, 0)),         # mask (resident)
            pl.BlockSpec((K * cin_p, f_p), lambda b, t: (0, 0)),         # w1 (resident)
            pl.BlockSpec((1, f_p), lambda b, t: (0, 0)),                 # b1
            pl.BlockSpec((K * f_p, cout_p), lambda b, t: (0, 0)),        # w2 (resident)
            pl.BlockSpec((1, cout_p), lambda b, t: (0, 0)),              # b2
        ],
        out_specs=pl.BlockSpec((None, Tt, cout_p), lambda b, t: (b, t, 0)),
        out_shape=jax.ShapeDtypeStruct((B, nT * Tt, cout_p), jnp.bfloat16),
        compiler_params=pltpu.CompilerParams(
            dimension_semantics=("parallel", "parallel"),
            vmem_limit_bytes=vmem_limit),
        cost_estimate=cost,
    )(xt, mt, w1c, b1p, w2c, b2p)

    # Strip tile / channel padding; slice + cast + transpose fuse into one pass.
    out = out[:, :T, :Cout].astype(jnp.float32)
    return jnp.transpose(out, (0, 2, 1))                 # back to (B, Cout, T)


# ----------------------------------------------------------------------------
# Plain-JAX f32 reference (matches the PyTorch module in eval mode).
# ----------------------------------------------------------------------------
def ffn_reference(params, x, x_mask):
    w1, b1, w2, b2 = params["w1"], params["b1"], params["w2"], params["b2"]

    def conv1d(inp, w, b):
        O, C, K = w.shape
        pad = K // 2
        T = inp.shape[-1]
        xp = jnp.pad(inp, ((0, 0), (0, 0), (pad, pad)))
        y = jnp.zeros((inp.shape[0], O, T), jnp.float32) + b[None, :, None]
        for k in range(K):
            y = y + jnp.einsum("oc,bct->bot", w[:, :, k], xp[:, :, k:k + T],
                               precision=jax.lax.Precision.HIGHEST)
        return y

    h = jnp.maximum(conv1d(x * x_mask, w1, b1), 0.0)
    # dropout: identity (p_dropout = 0.0 / eval mode)
    y = conv1d(h * x_mask, w2, b2)
    return y * x_mask


# ----------------------------------------------------------------------------
if __name__ == "__main__":
    B, CIN, COUT, FCH, K, T = 2, 64, 64, 256, 3, 64

    key = jax.random.PRNGKey(0)
    ks = jax.random.split(key, 6)
    scale = 0.05
    params = {
        "w1": jax.random.normal(ks[0], (FCH, CIN, K), jnp.float32) * scale,
        "b1": jax.random.normal(ks[1], (FCH,), jnp.float32) * scale,
        "w2": jax.random.normal(ks[2], (COUT, FCH, K), jnp.float32) * scale,
        "b2": jax.random.normal(ks[3], (COUT,), jnp.float32) * scale,
    }
    x = jax.random.normal(ks[4], (B, CIN, T), jnp.float32)
    lengths = jnp.array([T, T - 9], jnp.int32)
    x_mask = (jnp.arange(T)[None, :] < lengths[:, None]
              ).astype(jnp.float32)[:, None, :]          # (B, 1, T)

    fwd = jax.jit(ffn_forward)
    out = jax.block_until_ready(fwd(params, x, x_mask))

    ref = ffn_reference(params, x, x_mask)

    assert out.shape == (B, COUT, T)
    assert bool(jnp.all(jnp.isfinite(out)))
    max_err = float(jnp.max(jnp.abs(out - ref)))
    assert max_err < 5e-2, f"max abs error vs reference: {max_err}"
    print("KERNEL_OK")
</pallas_src>

<mosaic_0001>
module attributes {stable_mosaic.version = 11 : i64} {
  func.func @_ffn_kernel(%arg0: i32, %arg1: i32, %arg2: memref<1x136x128xf32, #tpu.memory_space<vmem>>, %arg3: memref<1x136x1xf32, #tpu.memory_space<vmem>>, %arg4: memref<384x256xbf16, #tpu.memory_space<vmem>>, %arg5: memref<1x256xf32, #tpu.memory_space<vmem>>, %arg6: memref<768x128xbf16, #tpu.memory_space<vmem>>, %arg7: memref<1x128xf32, #tpu.memory_space<vmem>>, %arg8: memref<1x128x128xbf16, #tpu.memory_space<vmem>>) attributes {dimension_semantics = [#tpu.dimension_semantics<parallel>, #tpu.dimension_semantics<parallel>], iteration_bounds = array<i64: 2, 1>, scalar_prefetch = 0 : i64, scratch_operands = 0 : i64, tpu.core_type = #tpu.core_type<tc>, window_params = [{transform_indices = @transform_0, window_bounds = array<i64: 1, 136, 128>}, {transform_indices = @transform_1, window_bounds = array<i64: 1, 136, 1>}, {pipeline_mode = #tpu.pipeline_mode<synchronous>, transform_indices = @transform_2, window_bounds = array<i64: 384, 256>}, {pipeline_mode = #tpu.pipeline_mode<synchronous>, transform_indices = @transform_3, window_bounds = array<i64: 1, 256>}, {pipeline_mode = #tpu.pipeline_mode<synchronous>, transform_indices = @transform_4, window_bounds = array<i64: 768, 128>}, {pipeline_mode = #tpu.pipeline_mode<synchronous>, transform_indices = @transform_5, window_bounds = array<i64: 1, 128>}, {transform_indices = @transform_6, window_bounds = array<i64: 1, 128, 128>}]} {
    %c128_i32 = arith.constant 128 : i32
    %0 = arith.muli %arg1, %c128_i32 : i32
    %1 = tpu.assume_multiple %0, 128 : i32
    %c0 = arith.constant 0 : index
    %2 = arith.index_cast %1 : i32 to index
    %c0_0 = arith.constant 0 : index
    %3 = vector.load %arg3[%c0, %2, %c0_0] : memref<1x136x1xf32, #tpu.memory_space<vmem>>, vector<1x132x1xf32>
    %4 = vector.shape_cast %3 : vector<1x132x1xf32> to vector<132x1xf32>
    %c0_1 = arith.constant 0 : index
    %5 = arith.index_cast %1 : i32 to index
    %c0_2 = arith.constant 0 : index
    %6 = vector.load %arg2[%c0_1, %5, %c0_2] : memref<1x136x128xf32, #tpu.memory_space<vmem>>, vector<1x132x128xf32>
    %7 = vector.shape_cast %6 : vector<1x132x128xf32> to vector<132x128xf32>
    %8 = vector.broadcast %4 : vector<132x1xf32> to vector<132x128xf32>
    %9 = arith.mulf %7, %8 : vector<132x128xf32>
    %10 = arith.truncf %9 : vector<132x128xf32> to vector<132x128xbf16>
    %11 = vector.extract_strided_slice %10 {offsets = [0, 0], sizes = [130, 128], strides = [1, 1]} : vector<132x128xbf16> to vector<130x128xbf16>
    %12 = vector.extract_strided_slice %10 {offsets = [1, 0], sizes = [130, 128], strides = [1, 1]} : vector<132x128xbf16> to vector<130x128xbf16>
    %13 = vector.extract_strided_slice %10 {offsets = [2, 0], sizes = [130, 128], strides = [1, 1]} : vector<132x128xbf16> to vector<130x128xbf16>
    %14 = tpu.concatenate %11, %12, %13 in 1 : vector<130x128xbf16>, vector<130x128xbf16>, vector<130x128xbf16> -> vector<130x384xbf16>
    %c0_3 = arith.constant 0 : index
    %c0_4 = arith.constant 0 : index
    %15 = vector.load %arg4[%c0_3, %c0_4] : memref<384x256xbf16, #tpu.memory_space<vmem>>, vector<384x256xbf16>
    %cst = arith.constant dense<0.000000e+00> : vector<130x256xf32>
    %16 = tpu.matmul %14, %15, %cst {dimension_numbers = #tpu.dot_dimension_numbers<[1], [0], [0], [1], [0, 0, 1, 1], [], []>} : vector<130x384xbf16>, vector<384x256xbf16>, vector<130x256xf32> -> vector<130x256xf32>
    %c0_5 = arith.constant 0 : index
    %c0_6 = arith.constant 0 : index
    %17 = vector.load %arg5[%c0_5, %c0_6] : memref<1x256xf32, #tpu.memory_space<vmem>>, vector<1x256xf32>
    %18 = vector.broadcast %17 : vector<1x256xf32> to vector<130x256xf32>
    %19 = arith.addf %16, %18 : vector<130x256xf32>
    %cst_7 = arith.constant 0.000000e+00 : f32
    %20 = vector.broadcast %cst_7 : f32 to vector<130x256xf32>
    %21 = arith.maximumf %19, %20 : vector<130x256xf32>
    %22 = vector.extract_strided_slice %4 {offsets = [1, 0], sizes = [130, 1], strides = [1, 1]} : vector<132x1xf32> to vector<130x1xf32>
    %23 = vector.broadcast %22 : vector<130x1xf32> to vector<130x256xf32>
    %24 = arith.mulf %21, %23 : vector<130x256xf32>
    %25 = arith.truncf %24 : vector<130x256xf32> to vector<130x256xbf16>
    %26 = vector.extract_strided_slice %25 {offsets = [0, 0], sizes = [128, 256], strides = [1, 1]} : vector<130x256xbf16> to vector<128x256xbf16>
    %27 = vector.extract_strided_slice %25 {offsets = [1, 0], sizes = [128, 256], strides = [1, 1]} : vector<130x256xbf16> to vector<128x256xbf16>
    %28 = vector.extract_strided_slice %25 {offsets = [2, 0], sizes = [128, 256], strides = [1, 1]} : vector<130x256xbf16> to vector<128x256xbf16>
    %29 = tpu.concatenate %26, %27, %28 in 1 : vector<128x256xbf16>, vector<128x256xbf16>, vector<128x256xbf16> -> vector<128x768xbf16>
    %c0_8 = arith.constant 0 : index
    %c0_9 = arith.constant 0 : index
    %30 = vector.load %arg6[%c0_8, %c0_9] : memref<768x128xbf16, #tpu.memory_space<vmem>>, vector<768x128xbf16>
    %cst_10 = arith.constant dense<0.000000e+00> : vector<128x128xf32>
    %31 = tpu.matmul %29, %30, %cst_10 {dimension_numbers = #tpu.dot_dimension_numbers<[1], [0], [0], [1], [0, 0, 1, 1], [], []>} : vector<128x768xbf16>, vector<768x128xbf16>, vector<128x128xf32> -> vector<128x128xf32>
    %c0_11 = arith.constant 0 : index
    %c0_12 = arith.constant 0 : index
    %32 = vector.load %arg7[%c0_11, %c0_12] : memref<1x128xf32, #tpu.memory_space<vmem>>, vector<1x128xf32>
    %33 = vector.broadcast %32 : vector<1x128xf32> to vector<128x128xf32>
    %34 = arith.addf %31, %33 : vector<128x128xf32>
    %35 = vector.extract_strided_slice %4 {offsets = [2, 0], sizes = [128, 1], strides = [1, 1]} : vector<132x1xf32> to vector<128x1xf32>
    %36 = vector.broadcast %35 : vector<128x1xf32> to vector<128x128xf32>
    %37 = arith.mulf %34, %36 : vector<128x128xf32>
    %38 = arith.truncf %37 : vector<128x128xf32> to vector<128x128xbf16>
    %c0_13 = arith.constant 0 : index
    %c0_14 = arith.constant 0 : index
    %c0_15 = arith.constant 0 : index
    %39 = vector.load %arg8[%c0_13, %c0_14, %c0_15] : memref<1x128x128xbf16, #tpu.memory_space<vmem>>, vector<1x128x128xbf16>
    %40 = vector.shape_cast %39 : vector<1x128x128xbf16> to vector<128x128xbf16>
    %41 = vector.shape_cast %38 : vector<128x128xbf16> to vector<1x128x128xbf16>
    tpu.vector_store %arg8[%c0_13, %c0_14, %c0_15], %41 {strides = array<i32>} : memref<1x128x128xbf16, #tpu.memory_space<vmem>>, vector<1x128x128xbf16>,
    return
  }
  func.func @transform_0(%arg0: i32, %arg1: i32) -> (i32, i32, i32) {
    %c0_i32 = arith.constant 0 : i32
    %c0_i32_0 = arith.constant 0 : i32
    %c0_i32_1 = arith.constant 0 : i32
    return %arg0, %c0_i32, %c0_i32_0 : i32, i32, i32
  }
  func.func @transform_1(%arg0: i32, %arg1: i32) -> (i32, i32, i32) {
    %c0_i32 = arith.constant 0 : i32
    %c0_i32_0 = arith.constant 0 : i32
    %c0_i32_1 = arith.constant 0 : i32
    return %arg0, %c0_i32, %c0_i32_0 : i32, i32, i32
  }
  func.func @transform_2(%arg0: i32, %arg1: i32) -> (i32, i32) {
    %c0_i32 = arith.constant 0 : i32
    %c0_i32_0 = arith.constant 0 : i32
    %c0_i32_1 = arith.constant 0 : i32
    return %c0_i32, %c0_i32_0 : i32, i32
  }
  func.func @transform_3(%arg0: i32, %arg1: i32) -> (i32, i32) {
    %c0_i32 = arith.constant 0 : i32
    %c0_i32_0 = arith.constant 0 : i32
    %c0_i32_1 = arith.constant 0 : i32
    return %c0_i32, %c0_i32_0 : i32, i32
  }
  func.func @transform_4(%arg0: i32, %arg1: i32) -> (i32, i32) {
    %c0_i32 = arith.constant 0 : i32
    %c0_i32_0 = arith.constant 0 : i32
    %c0_i32_1 = arith.constant 0 : i32
    return %c0_i32, %c0_i32_0 : i32, i32
  }
  func.func @transform_5(%arg0: i32, %arg1: i32) -> (i32, i32) {
    %c0_i32 = arith.constant 0 : i32
    %c0_i32_0 = arith.constant 0 : i32
    %c0_i32_1 = arith.constant 0 : i32
    return %c0_i32, %c0_i32_0 : i32, i32
  }
  func.func @transform_6(%arg0: i32, %arg1: i32) -> (i32, i32, i32) {
    %c0_i32 = arith.constant 0 : i32
    %c0_i32_0 = arith.constant 0 : i32
    return %arg0, %arg1, %c0_i32 : i32, i32, i32
  }
}

</mosaic_0001>

<bundles_post_ra>
// kernel: ffn_forward.1
= control target key start
LH: loop header
LB: loop body
LE: loop exit
PB: predicated region body
PF: predicated region fallthrough
CT: control target
= control target key end

     0   :  { %s2989_s21 = smov 0   ;;  %s2991_s22 = smov 0   ;;  %s4097_s0 = inlined_call_operand.vmem [shape: f32[2,136,128], index: 0, kind: input, shape index: {}]   ;;  %s4098_s1 = inlined_call_operand.vmem [shape: f32[2,136,1], index: 1, kind: input, shape index: {}]   ;;  %s4099_s2 = inlined_call_operand.vmem [shape: bf16[384,256], index: 2, kind: input, shape index: {}]   ;;  %s4100_s3 = inlined_call_operand.vmem [shape: f32[1,256], index: 3, kind: input, shape index: {}]   ;;  %s4101_s4 = inlined_call_operand.vmem [shape: bf16[768,128], index: 4, kind: input, shape index: {}]   ;;  %s4102_s5 = inlined_call_operand.vmem [shape: f32[1,128], index: 5, kind: input, shape index: {}]   ;;  %s4103_s6 = inlined_call_operand.vmem [shape: bf16[2,128,128], index: 6, kind: output, shape index: {}]  }
   0x1   :  { %s2993_s23 = smov 0  }
   0x2 LB: > { %s28_s24 = sadd.s32 1, %s2947_s22  ;;  %p2389_p0 = scmp.ge.s32.totalorder %s2951_s23, 1  ;;  %s2951_s23 = sphi %s2993_s23, %s16_s23   ;;  %s2947_s22 = sphi %s2991_s22, %s4139_s22   ;;  %s2943_s21 = sphi %s2989_s21, %s4138_s21  }
   0x3   : > { %p30_p1 = scmp.ge.s32.totalorder %s28_s24, 2  ;;  %p236_p2 = scmp.lt.s32.totalorder %s2951_s23, 3 }
   0x5   : > { %s4141_s24 = smov (%p30_p1, %s28_s24), 0  ;;  %p237_p3 = pnand %p2389_p0, %p236_p2 }
   0x7   : > { %240 = sbr.rel (%p237_p3) target bundleno = 684 (0x2ac), region = 44 }
   0xc   : > { %p275_p4 = scmp.lt.s32.totalorder %s2943_s21, 1  ;;  %v2809_v0 = vld [vmem:[%s4099_s2 + $0x74] ss:$8 sps:$4 sm:$0xff]   ;;  %v2953_v1 = vmov 0   ;;  %v2811_v2 = vld [vmem:[%s4099_s2 + $0x70] ss:$8 sps:$4 sm:$0xff]  }
   0xd   : > { %2808 = vset.pattern.permute.xlu1 %v2953_v1  ;;  %2807 = vset.pattern.permute.xlu0 %v2953_v1  ;;  %v2812_v3 = vld [vmem:[%s4099_s2 + $0x64] ss:$8 sps:$4 sm:$0xff]   ;;  %v2814_v4 = vld [vmem:[%s4099_s2 + $0x60] ss:$8 sps:$4 sm:$0xff]   ;;  %v2815_v5 = vld [vmem:[%s4099_s2 + $0x54] ss:$8 sps:$4 sm:$0xff]  }
   0xe   : > { %s4143_s21 = smov (!%p275_p4, %s2943_s21), 1  ;;  %861 = vmatprep.subr.bf16.mxu0 %v2809_v0  ;;  %1014 = vmatprep.mubr.bf16.mxu1 %v2953_v1  ;;  %v2817_v8 = vld [vmem:[%s4099_s2 + $0x50] ss:$8 sps:$4 sm:$0xff]   ;;  %v2818_v11 = vld [vmem:[%s4099_s2 + $0x44] ss:$8 sps:$4 sm:$0xff]   ;;  %vm534_vm0 = vcmask 1046528  }
   0xf   : > { %862 = vmatpush1.bf16.msra.mxu0 %v2811_v2  ;;  %s2781_s9 = smul.u32 136, %s4143_s21  ;;  %v2820_v12 = vld [vmem:[%s4099_s2 + $0x40] ss:$8 sps:$4 sm:$0xff]   ;;  %v2821_v13 = vld [vmem:[%s4099_s2 + $0x34] ss:$8 sps:$4 sm:$0xff]   ;;  %vm2142_vm1 = vcmask 1045504  }
  0x10   : > { %863 = vmatprep.subr.bf16.mxu0 %v2812_v3  ;;  %v2823_v16 = vld [vmem:[%s4099_s2 + $0x30] ss:$8 sps:$4 sm:$0xff]   ;;  %v2830_v18 = vld [vmem:[%s4099_s2 + $0x174] ss:$8 sps:$4 sm:$0xff]   ;;  %v2824_v20 = vld [vmem:[%s4099_s2 + $0x24] ss:$8 sps:$4 sm:$0xff]  }
  0x11   : > { %s3033_s14 = scalar_lea.vmem %s4098_s1, %s2781_s9  ;;  %982 = vmatprep.subr.bf16.mxu1 %v2830_v18  ;;  %v2834_v21 = vld [vmem:[%s4099_s2 + $0x170] ss:$8 sps:$4 sm:$0xff]   ;;  %v2836_v22 = vld [vmem:[%s4099_s2 + $0x164] ss:$8 sps:$4 sm:$0xff]   ;;  %v2826_v25 = vld [vmem:[%s4099_s2 + $0x20] ss:$8 sps:$4 sm:$0xff]   ;;  %s3192_s15 = scalar_lea.vmem %s4097_s0, %s2781_s9 }
  0x12   : > { %v300_v6 = vld [vmem:[%s3033_s14 + $0x10] sm:$0xff]  ;;  %v298_v7 = vld [vmem:[%s3033_s14] sm:$0xff]  ;;  %v301_v9 = vld [vmem:[%s3033_s14 + $0x18] sm:$0xff]  ;;  %983 = vmatpush1.bf16.msra.mxu1 %v2834_v21  ;;  %vm444_vm2 = vsmask.f32 7424  ;;  %s2509_s11 = sshll.u32 %s4143_s21, 6 }
  0x13   : > { %864 = vmatpush1.bf16.msra.mxu0 %v2814_v4  ;;  %345 = vperm.xlu1 %2808, %v300_v6   ;;  %v299_v10 = vld [vmem:[%s3033_s14 + $0x8] sm:$0xff]  ;;  %v302_v15 = vld [vmem:[%s3033_s14 + $0x20] sm:$0xff]  ;;  %v305_v17 = vld [vmem:[%s3033_s14 + $0x38] sm:$0xff]  ;;  %s4019_s9 = scalar_lea.vmem %s4103_s6, %s2509_s11 }
  0x14   : > { %335 = vperm.xlu0 %2807, %v298_v7   ;;  %865 = vmatprep.subr.bf16.mxu0 %v2815_v5  ;;  %v303_v14 = vld [vmem:[%s3033_s14 + $0x28] sm:$0xff]  ;;  %v304_v19 = vld [vmem:[%s3033_s14 + $0x30] sm:$0xff]  ;;  %v306_v24 = vld [vmem:[%s3033_s14 + $0x40] sm:$0xff] }
  0x15   : > { %v307_v23 = vld [vmem:[%s3033_s14 + $0x48] sm:$0xff]  ;;  %v2827_v27 = vld [vmem:[%s4099_s2 + $0x14] ss:$8 sps:$4 sm:$0xff]   ;;  %984 = vmatprep.subr.bf16.mxu1 %v2836_v22  ;;  %v2829_v29 = vld [vmem:[%s4099_s2 + $0x10] ss:$8 sps:$4 sm:$0xff]  }
  0x16   : > { %v2840_v26 = vld [vmem:[%s4099_s2 + $0x160] ss:$8 sps:$4 sm:$0xff]   ;;  %v2842_v28 = vld [vmem:[%s4099_s2 + $0x154] ss:$8 sps:$4 sm:$0xff]   ;;  %v2846_v31 = vld [vmem:[%s4099_s2 + $0x150] ss:$8 sps:$4 sm:$0xff]  }
  0x17   : > { %866 = vmatpush1.bf16.msra.mxu0 %v2817_v8  ;;  %350 = vperm.xlu1 %2808, %v301_v9   ;;  %v309_v30 = vld [vmem:[%s3033_s14 + $0x58] sm:$0xff]  ;;  %v308_v32 = vld [vmem:[%s3033_s14 + $0x50] sm:$0xff]  ;;  %v2832_v33 = vld [vmem:[%s4099_s2 + $0x4] ss:$8 sps:$4 sm:$0xff]  }
  0x18   : > { %340 = vperm.xlu0 %2807, %v299_v10   ;;  %867 = vmatprep.subr.bf16.mxu0 %v2818_v11  ;;  %v2848_v34 = vld [vmem:[%s4099_s2 + $0x144] ss:$8 sps:$4 sm:$0xff]   ;;  %v2835_v35 = vld [vmem:[%s4099_s2] ss:$8 sps:$4 sm:$0xff]   ;;  %v2838_v39 = vld [vmem:[%s4099_s2 + $0xf4] ss:$8 sps:$4 sm:$0xff]  }
  0x19   : > { %985 = vmatpush1.bf16.msra.mxu1 %v2840_v26  ;;  %v2852_v36 = vld [vmem:[%s4099_s2 + $0x140] ss:$8 sps:$4 sm:$0xff]   ;;  %v2854_v40 = vld [vmem:[%s4099_s2 + $0x134] ss:$8 sps:$4 sm:$0xff]   ;;  %v2841_v42 = vld [vmem:[%s4099_s2 + $0xf0] ss:$8 sps:$4 sm:$0xff]  }
  0x1a   : > { %986 = vmatprep.subr.bf16.mxu1 %v2842_v28  ;;  %v311_v37 = vld [vmem:[%s3033_s14 + $0x68] sm:$0xff]  ;;  %v310_v38 = vld [vmem:[%s3033_s14 + $0x60] sm:$0xff]  ;;  %v313_v41 = vld [vmem:[%s3033_s14 + $0x78] sm:$0xff] }
  0x1b   : > { %868 = vmatpush1.bf16.msra.mxu0 %v2820_v12  ;;  %360 = vperm.xlu1 %2808, %v303_v14   ;;  %v2858_v43 = vld [vmem:[%s4099_s2 + $0x130] ss:$8 sps:$4 sm:$0xff]   ;;  %v2844_v45 = vld [vmem:[%s4099_s2 + $0xe4] ss:$8 sps:$4 sm:$0xff]   ;;  %v2847_v47 = vld [vmem:[%s4099_s2 + $0xe0] ss:$8 sps:$4 sm:$0xff]  }
  0x1c   : > { %355 = vperm.xlu0 %2807, %v302_v15   ;;  %869 = vmatprep.subr.bf16.mxu0 %v2821_v13  ;;  %v312_v44 = vld [vmem:[%s3033_s14 + $0x70] sm:$0xff]  ;;  %v2860_v46 = vld [vmem:[%s4099_s2 + $0x124] ss:$8 sps:$4 sm:$0xff]   ;;  %v2864_v48 = vld [vmem:[%s4099_s2 + $0x120] ss:$8 sps:$4 sm:$0xff]  }
  0x1d   : > { %987 = vmatpush1.bf16.msra.mxu1 %v2846_v31  ;;  %v2850_v49 = vld [vmem:[%s4099_s2 + $0xd4] ss:$8 sps:$4 sm:$0xff]   ;;  %v314_v50 = vld [vmem:[%s3033_s14 + $0x80] sm:$0xf]  ;;  %v2853_v52 = vld [vmem:[%s4099_s2 + $0xd0] ss:$8 sps:$4 sm:$0xff]  }
  0x1e   : > { %988 = vmatprep.subr.bf16.mxu1 %v2848_v34  ;;  %v2866_v51 = vld [vmem:[%s4099_s2 + $0x114] ss:$8 sps:$4 sm:$0xff]   ;;  %v2870_v53 = vld [vmem:[%s4099_s2 + $0x110] ss:$8 sps:$4 sm:$0xff]   ;;  %v2856_v54 = vld [vmem:[%s4099_s2 + $0xc4] ss:$8 sps:$4 sm:$0xff]  }
  0x1f   : > { %870 = vmatpush1.bf16.msra.mxu0 %v2823_v16  ;;  %370 = vperm.xlu1 %2808, %v305_v17   ;;  %v2872_v55 = vld [vmem:[%s4099_s2 + $0x104] ss:$8 sps:$4 sm:$0xff]   ;;  %v2859_v56 = vld [vmem:[%s4099_s2 + $0xc0] ss:$8 sps:$4 sm:$0xff]   ;;  %v2862_v57 = vld [vmem:[%s4099_s2 + $0xb4] ss:$8 sps:$4 sm:$0xff]  }
  0x20   : > { %365 = vperm.xlu0 %2807, %v304_v19   ;;  %871 = vmatprep.subr.bf16.mxu0 %v2824_v20  ;;  %v2876_v58 = vld [vmem:[%s4099_s2 + $0x100] ss:$8 sps:$4 sm:$0xff]   ;;  %v2865_v59 = vld [vmem:[%s4099_s2 + $0xb0] ss:$8 sps:$4 sm:$0xff]   ;;  %v2868_v60 = vld [vmem:[%s4099_s2 + $0xa4] ss:$8 sps:$4 sm:$0xff]  }
  0x21   : > { %989 = vmatpush1.bf16.msra.mxu1 %v2852_v36  ;;  %v2871_v61 = vld [vmem:[%s4099_s2 + $0xa0] ss:$8 sps:$4 sm:$0xff]   ;;  %v2874_v62 = vld [vmem:[%s4099_s2 + $0x94] ss:$8 sps:$4 sm:$0xff]   ;;  %v2877_v63 = vld [vmem:[%s4099_s2 + $0x90] ss:$8 sps:$4 sm:$0xff]  }
  0x22   : > { %990 = vmatprep.subr.bf16.mxu1 %v2854_v40  ;;  %v2878_v0 = vld [vmem:[%s4099_s2 + $0x84] ss:$8 sps:$4 sm:$0xff]   ;;  %v2880_v2 = vld [vmem:[%s4099_s2 + $0x80] ss:$8 sps:$4 sm:$0xff]   ;;  %v2881_v3 = vld [vmem:[%s4101_s4 + $0x78] sm:$0xff]  }
  0x23   : > { %872 = vmatpush1.bf16.msra.mxu0 %v2826_v25  ;;  %380 = vperm.xlu1 %2808, %v307_v23   ;;  %v2889_v4 = vld [vmem:[%s4101_s4 + $0xf8] sm:$0xff]   ;;  %v318_v7 = vld [vmem:[%s3192_s15 + $0x10] sm:$0xff]  ;;  %v316_v8 = vld [vmem:[%s3192_s15] sm:$0xff] }
  0x24   : > { %375 = vperm.xlu0 %2807, %v306_v24   ;;  %873 = vmatprep.subr.bf16.mxu0 %v2827_v27  ;;  %v319_v9 = vld [vmem:[%s3192_s15 + $0x18] sm:$0xff]  ;;  %v317_v10 = vld [vmem:[%s3192_s15 + $0x8] sm:$0xff]  ;;  %v320_v26 = vld [vmem:[%s3192_s15 + $0x20] sm:$0xff] }
  0x25   : > { %991 = vmatpush1.bf16.msra.mxu1 %v2858_v43  ;;  %v321_v25 = vld [vmem:[%s3192_s15 + $0x28] sm:$0xff] }
  0x26   : > { %992 = vmatprep.subr.bf16.mxu1 %v2860_v46 }
  0x27   : > { %874 = vmatpush1.bf16.msra.mxu0 %v2829_v29  ;;  %390 = vperm.xlu1 %2808, %v309_v30  }
  0x28   : > { %385 = vperm.xlu0 %2807, %v308_v32   ;;  %875 = vmatprep.subr.bf16.mxu0 %v2832_v33 }
  0x29   : > { %993 = vmatpush1.bf16.msra.mxu1 %v2864_v48 }
  0x2a   : > { %994 = vmatprep.subr.bf16.mxu1 %v2866_v51 }
  0x2b   : > { %876 = vmatpush1.bf16.msra.mxu0 %v2835_v35  ;;  %400 = vperm.xlu1 %2808, %v311_v37  }
  0x2c   : > { %395 = vperm.xlu0 %2807, %v310_v38   ;;  %877 = vmatprep.subr.bf16.mxu0 %v2838_v39 }
  0x2d   : > { %995 = vmatpush1.bf16.msra.mxu1 %v2870_v53 }
  0x2e   : > { %996 = vmatprep.subr.bf16.mxu1 %v2872_v55 }
  0x2f   : > { %878 = vmatpush2.bf16.msra.mxu0 %v2841_v42  ;;  %410 = vperm.xlu1 %2808, %v313_v41   ;;  %v323_v41 = vld [vmem:[%s3192_s15 + $0x38] sm:$0xff]  ;;  %v322_v42 = vld [vmem:[%s3192_s15 + $0x30] sm:$0xff] }
  0x30   : > { %405 = vperm.xlu0 %2807, %v312_v44   ;;  %879 = vmatprep.subr.bf16.mxu0 %v2844_v45  ;;  %v2882_v45 = vld [vmem:[%s4101_s4 + $0x38] sm:$0xff]  }
  0x31   : > { %997 = vmatpush1.bf16.msra.mxu1 %v2876_v58 }
  0x32   : > { %2573 = vmatprep.subr.bf16.mxu1 %v2881_v3  ;;  %v2885_v3 = vld [vmem:[%s4101_s4 + $0x68] sm:$0xff]  }
  0x33   : > { %880 = vmatpush2.bf16.msra.mxu0 %v2847_v47 }
  0x34   : > { %415 = vperm.xlu0 %2807, %v314_v50   ;;  %881 = vmatprep.subr.bf16.mxu0 %v2850_v49  ;;  %v2883_v49 = vld [vmem:[%s4101_s4 + $0x70] sm:$0xff]  }
  0x37   : > { %882 = vmatpush2.bf16.msra.mxu0 %v2853_v52 }
  0x38   : > { %883 = vmatprep.subr.bf16.mxu0 %v2856_v54 }
  0x3b   : > { %884 = vmatpush2.bf16.msra.mxu0 %v2859_v56 }
  0x3c   : > { %885 = vmatprep.subr.bf16.mxu0 %v2862_v57 }
  0x3f   : > { %886 = vmatpush2.bf16.msra.mxu0 %v2865_v59 }
  0x40   : > { %887 = vmatprep.subr.bf16.mxu0 %v2868_v60 }
  0x43   : > { %888 = vmatpush2.bf16.msra.mxu0 %v2871_v61 }
  0x44   : > { %889 = vmatprep.subr.bf16.mxu0 %v2874_v62  ;;  %v2884_v62 = vld [vmem:[%s4101_s4 + $0x30] sm:$0xff]  }
  0x47   : > { %890 = vmatpush2.bf16.msra.mxu0 %v2877_v63 }
  0x48   : > { %891 = vmatprep.subr.bf16.mxu0 %v2878_v0 }
  0x4b   : > { %892 = vmatpush2.bf16.msra.mxu0 %v2880_v2 }
  0x4c   : > { %2637 = vmatprep.subr.bf16.mxu0 %v2889_v4 }
  0x8e   : > { %v346_v5 = vpop.permute.xlu1 %345 }
  0x8f   : > { %v336_v6 = vpop.permute.xlu0 %335  ;;  %v420_v11 = vmul.f32 %v346_v5, %v318_v7  ;;  %v1141_v12 = vrot.slane %v346_v5, 1  ;;  %v2146_v13 = vrot.slane %v346_v5, 2  ;;  %v325_v5 = vld [vmem:[%s3192_s15 + $0x48] sm:$0xff]  ;;  %v324_v7 = vld [vmem:[%s3192_s15 + $0x40] sm:$0xff] }
  0x90   : > { %v418_v14 = vmul.f32 %v336_v6, %v316_v8  ;;  %v1138_v21 = vrot.slane %v336_v6, 1  ;;  %v2143_v22 = vrot.slane %v336_v6, 2 }
  0x92   : > { %v3198_v15 = vpop.permute.xlu1 %350 }
  0x93   : > { %v341_v16 = vpop.permute.xlu0 %340  ;;  %v421_v17 = vmul.f32 %v3198_v15, %v319_v9  ;;  %v1143_v18 = vrot.slane %v3198_v15, 1  ;;  %v2148_v19 = vrot.slane %v3198_v15, 2 }
  0x94   : > { %v419_v20 = vmul.f32 %v341_v16, %v317_v10  ;;  %v1139_v23 = vrot.slane %v341_v16, 1  ;;  %v2144_v24 = vrot.slane %v341_v16, 2 }
  0x95   : > { %v3205_v27 = vpack.c.bf16 %v421_v17, %v420_v11  ;;  %v3210_v29 = vsel %vm534_vm0, %v1141_v12, %v1143_v18  ;;  %v3215_v30 = vsel %vm2142_vm1, %v2146_v13, %v2148_v19  ;;  %v2886_v17 = vld [vmem:[%s4101_s4 + $0x28] sm:$0xff]  }
  0x96   : > { %v3207_v28 = vpack.c.bf16 %v419_v20, %v418_v14  ;;  %4105 = vst [vmem:[#allocation2_spill] sm:$0xff] %v3215_v30  ;;  %v3217_v31 = vpop.permute.xlu1 %360  ;;  %v3222_v33 = vsel %vm534_vm0, %v1138_v21, %v1139_v23  ;;  %v3225_v34 = vsel %vm534_vm0, %v1139_v23, %v1141_v12  ;;  %v3228_v35 = vsel %vm2142_vm1, %v2143_v22, %v2144_v24  ;;  %v2887_v22 = vld [vmem:[%s4101_s4 + $0x60] sm:$0xff]   ;;  %v2890_v23 = vld [vmem:[%s4101_s4 + $0xb8] sm:$0xff]  }
  0x97   : > { %v3219_v32 = vpop.permute.xlu0 %355  ;;  %v3231_v36 = vsel %vm2142_vm1, %v2144_v24, %v2146_v13  ;;  %v423_v37 = vmul.f32 %v3217_v31, %v321_v25  ;;  %v1147_v38 = vrot.slane %v3217_v31, 1  ;;  %v536_v44 = vrot.slane %v3205_v27, 1 }
  0x98   : > { %v422_v39 = vmul.f32 %v3219_v32, %v320_v26  ;;  %v1145_v40 = vrot.slane %v3219_v32, 1  ;;  %v535_v43 = vrot.slane %v3207_v28, 1  ;;  %v448_v47 = vshll.u32 %v3207_v28, 16 }
  0x99   : > { %v453_v48 = vshll.u32 %v3205_v27, 16  ;;  %v446_v59 = vshrl.u32 %v3207_v28, 16  ;;  %v457_v0 = vshrl.u32 %v3205_v27, 16 }
  0x9a   : > { %v3244_v46 = vpack.c.bf16 %v423_v37, %v422_v39  ;;  %v3251_v50 = vpop.permute.xlu1 %370  ;;  %v537_v52 = vsel %vm534_vm0, %v535_v43, %v536_v44  ;;  %v3257_v53 = vsel %vm534_vm0, %v1143_v18, %v1145_v40  ;;  %v3260_v54 = vsel %vm534_vm0, %v1145_v40, %v1147_v38  ;;  %v2893_v39 = vld [vmem:[%s4101_s4 + $0xf0] sm:$0xff]  }
  0x9b   : > { %v3253_v51 = vpop.permute.xlu0 %365  ;;  %v425_v55 = vmul.f32 %v3251_v50, %v323_v41  ;;  %v1151_v56 = vrot.slane %v3251_v50, 1  ;;  %1015 = vmatmul.mubr.bf16.vlgmr.msra.gmra.mxu1 %v537_v52  ;;  %v450_v60 = vrot.slane %v448_v47, 1  ;;  %v455_v61 = vrot.slane %v453_v48, 1  ;;  %v2888_v41 = vld [vmem:[%s4101_s4 + $0x20] sm:$0xff]   ;;  %v2894_v47 = vld [vmem:[%s4101_s4 + $0xb0] sm:$0xff]   ;;  %v327_v48 = vld [vmem:[%s3192_s15 + $0x58] sm:$0xff] }
  0x9c   : > { %v424_v57 = vmul.f32 %v3253_v51, %v322_v42  ;;  %v1149_v58 = vrot.slane %v3253_v51, 1  ;;  %1024 = vmatprep.mubr.bf16.mxu1 %v2953_v1  ;;  %2574 = vmatpush3.bf16.msra.mxu1 %v2882_v45  ;;  %v461_v2 = vshll.u32 %v3244_v46, 16  ;;  %v538_v9 = vrot.slane %v3244_v46, 1  ;;  %v2891_v45 = vld [vmem:[%s4101_s4 + $0x58] sm:$0xff]   ;;  %v326_v52 = vld [vmem:[%s3192_s15 + $0x50] sm:$0xff] }
  0x9d   : > { %2575 = vmatprep.subr.bf16.mxu1 %v2883_v49  ;;  %v451_v8 = vor.u32 %v450_v60, %v446_v59  ;;  %v459_v14 = vor.u32 %v457_v0, %v455_v61  ;;  %v465_v43 = vshrl.u32 %v3244_v46, 16 }
  0x9e   : > { %v3271_v63 = vpack.c.bf16 %v425_v55, %v424_v57  ;;  %v3278_v4 = vpop.permute.xlu1 %380  ;;  %v3286_v10 = vsel %vm534_vm0, %v1147_v38, %v1149_v58  ;;  %v3289_v11 = vsel %vm534_vm0, %v1149_v58, %v1151_v56  ;;  %v463_v16 = vrot.slane %v461_v2, 1 }
  0x9f   : > { %v3281_v6 = vpop.permute.xlu0 %375  ;;  %v456_v13 = vsel %vm444_vm2, %v451_v8, %v455_v61  ;;  %v427_v18 = vmul.f32 %v3278_v4, %v325_v5  ;;  %v1155_v20 = vrot.slane %v3278_v4, 1  ;;  %v539_v37 = vsel %vm534_vm0, %v536_v44, %v538_v9 }
  0xa0   : > { %v1153_v12 = vrot.slane %v3281_v6, 1  ;;  %2576 = vmatpush3.bf16.msra.mxu1 %v2884_v62  ;;  %v426_v21 = vmul.f32 %v3281_v6, %v324_v7  ;;  %893 = vmatprep.mubr.bf16.mxu0 %v456_v13  ;;  %v464_v24 = vsel %vm444_vm2, %v459_v14, %v463_v16  ;;  %v469_v38 = vshll.u32 %v3271_v63, 16  ;;  %v2892_v62 = vld [vmem:[%s4101_s4 + $0x18] sm:$0xff]   ;;  %v2895_v7 = vld [vmem:[%s4101_s4 + $0x50] sm:$0xff]  }
  0xa1   : > { %2577 = vmatprep.subr.bf16.mxu1 %v2885_v3  ;;  %894 = vmatmul.mubr.bf16.vlgmr.msra.gmra.mxu0 %v3207_v28  ;;  %v540_v44 = vrot.slane %v3271_v63, 1  ;;  %v467_v61 = vor.u32 %v465_v43, %v463_v16  ;;  %v2158_v43 = vrot.slane %v3281_v6, 2 }
  0xa2   : > { %v3307_v25 = vpop.permute.xlu1 %390  ;;  %v3317_v40 = vsel %vm534_vm0, %v1151_v56, %v1153_v12  ;;  %903 = vmatprep.mubr.bf16.mxu0 %v464_v24  ;;  %v3324_v42 = vpack.c.bf16 %v427_v18, %v426_v21  ;;  %2638 = vmatpush3.bf16.msra.mxu0 %v2890_v23  ;;  %v471_v57 = vrot.slane %v469_v38, 1  ;;  %v3342_v58 = vsel %vm534_vm0, %v1153_v12, %v1155_v20  ;;  %v2896_v21 = vld [vmem:[%s4101_s4 + $0x10] sm:$0xff]   ;;  %v329_v24 = vld [vmem:[%s3192_s15 + $0x68] sm:$0xff] }
  0xa3   : > { %v3309_v26 = vpop.permute.xlu0 %385  ;;  %1025 = vmatmul.mubr.bf16.gmra.mxu1 %v539_v37  ;;  %v1159_v49 = vrot.slane %v3307_v25, 1  ;;  %2639 = vmatprep.subr.bf16.mxu0 %v2893_v39  ;;  %v429_v0 = vmul.f32 %v3307_v25, %v327_v48  ;;  %v541_v3 = vsel %vm534_vm0, %v538_v9, %v540_v44  ;;  %v2156_v18 = vrot.slane %v3251_v50, 2  ;;  %v328_v37 = vld [vmem:[%s3192_s15 + $0x60] sm:$0xff] }
  0xa4   : > { %v1157_v28 = vrot.slane %v3309_v26, 1  ;;  %1034 = vmatprep.mubr.bf16.mxu1 %v2953_v1  ;;  %2578 = vmatpush3.bf16.msra.mxu1 %v2886_v17  ;;  %v428_v2 = vmul.f32 %v3309_v26, %v326_v52  ;;  %v477_v5 = vshll.u32 %v3324_v42, 16  ;;  %v472_v12 = vsel %vm444_vm2, %v467_v61, %v471_v57 }
  0xa5   : > { %2579 = vmatprep.subr.bf16.mxu1 %v2887_v22  ;;  %v2152_v17 = vrot.slane %v3217_v31, 2  ;;  %v2154_v22 = vrot.slane %v3253_v51, 2  ;;  %v542_v39 = vrot.slane %v3324_v42, 1  ;;  %v2160_v51 = vrot.slane %v3278_v4, 2 }
  0xa6   : > { %v3337_v55 = vpop.permute.xlu1 %400  ;;  %v3345_v59 = vsel %vm534_vm0, %v1155_v20, %v1157_v28  ;;  %2640 = vmatpush3.bf16.msra.mxu0 %v2894_v47  ;;  %v3368_v9 = vsel %vm534_vm0, %v1157_v28, %v1159_v49  ;;  %v3382_v23 = vpack.c.bf16 %v429_v0, %v428_v2  ;;  %v479_v38 = vrot.slane %v477_v5, 1 }
  0xa7   : > { %v3339_v56 = vpop.permute.xlu0 %395  ;;  %v1163_v8 = vrot.slane %v3337_v55, 1  ;;  %v2162_v48 = vrot.slane %v3309_v26, 2  ;;  %v2168_v61 = vrot.slane %v3337_v55, 2  ;;  %v543_v26 = vsel %vm534_vm0, %v540_v44, %v542_v39 }
  0xa8   : > { %v1161_v60 = vrot.slane %v3339_v56, 1  ;;  %2580 = vmatpush3.bf16.msra.mxu1 %v2888_v41  ;;  %v430_v52 = vmul.f32 %v3339_v56, %v328_v37  ;;  %v485_v4 = vshll.u32 %v3382_v23, 16  ;;  %v3428_v2 = vsel %vm2142_vm1, %v2152_v17, %v2154_v22 }
  0xa9   : > { %2581 = vmatprep.subr.bf16.mxu1 %v2891_v45  ;;  %904 = vmatmul.mubr.bf16.gmra.mxu0 %v3205_v27  ;;  %v2150_v27 = vrot.slane %v3219_v32, 2  ;;  %v473_v32 = vshrl.u32 %v3271_v63, 16  ;;  %v2164_v45 = vrot.slane %v3307_v25, 2  ;;  %v3433_v5 = vsel %vm2142_vm1, %v2154_v22, %v2156_v18 }
  0xaa   : > { %v3363_v13 = vpop.permute.xlu1 %410  ;;  %v3371_v16 = vsel %vm534_vm0, %v1159_v49, %v1161_v60  ;;  %913 = vmatprep.mubr.bf16.mxu0 %v472_v12  ;;  %v3392_v28 = vsel %vm534_vm0, %v1161_v60, %v1163_v8  ;;  %v431_v49 = vmul.f32 %v3337_v55, %v329_v24  ;;  %v544_v12 = vrot.slane %v3382_v23, 1 }
  0xab   : > { %v3365_v14 = vpop.permute.xlu0 %405  ;;  %1035 = vmatmul.mubr.bf16.gmra.mxu1 %v541_v3  ;;  %v1167_v31 = vrot.slane %v3363_v13, 1  ;;  %v475_v60 = vor.u32 %v473_v32, %v471_v57  ;;  %v3422_v55 = vsel %vm2142_vm1, %v2150_v27, %v2152_v17  ;;  %v3443_v17 = vsel %vm2142_vm1, %v2160_v51, %v2162_v48 }
  0xac   : > { %v1165_v20 = vrot.slane %v3365_v14, 1  ;;  %1044 = vmatprep.mubr.bf16.mxu1 %v2953_v1  ;;  %2582 = vmatpush3.bf16.msra.mxu1 %v2892_v62  ;;  %v2166_v62 = vrot.slane %v3339_v56, 2  ;;  %v2172_v56 = vrot.slane %v3363_v13, 2  ;;  %v2170_v0 = vrot.slane %v3365_v14, 2  ;;  %4106 = vst [vmem:[#allocation3_spill] sm:$0xff] %v3443_v17 }
  0xad   : > { %2583 = vmatprep.subr.bf16.mxu1 %v2895_v7  ;;  %v480_v25 = vsel %vm444_vm2, %v475_v60, %v479_v38  ;;  %v441_v44 = vpack.c.bf16 %v431_v49, %v430_v52  ;;  %v3436_v7 = vsel %vm2142_vm1, %v2156_v18, %v2158_v43  ;;  %v3447_v24 = vsel %vm2142_vm1, %v2162_v48, %v2164_v45 }
  0xae   : > { %v3395_v41 = vsel %vm534_vm0, %v1163_v8, %v1165_v20  ;;  %v3410_v6 = vsel %vm534_vm0, %v1165_v20, %v1167_v31  ;;  %v487_v8 = vrot.slane %v485_v4, 1  ;;  %v3440_v20 = vsel %vm2142_vm1, %v2158_v43, %v2160_v51  ;;  %4107 = vst [vmem:[#allocation4_spill] sm:$0xff] %v3447_v24 }
  0xaf   : > { %v3388_v50 = vpop.permute.xlu0 %415  ;;  %v3452_v22 = vsel %vm2142_vm1, %v2148_v19, %v2150_v27  ;;  %v3455_v18 = vsel %vm2142_vm1, %v2164_v45, %v2166_v62  ;;  %v3458_v37 = vsel %vm2142_vm1, %v2166_v62, %v2168_v61  ;;  %v3462_v32 = vsel %vm2142_vm1, %v2168_v61, %v2170_v0  ;;  %v332_v62 = vld [vmem:[%s3192_s15 + $0x80] sm:$0xf] }
  0xb0   : > { %v3401_v47 = vrot.slane %v3388_v50, 1  ;;  %2584 = vmatpush3.bf16.msra.mxu1 %v2896_v21  ;;  %v2174_v3 = vrot.slane %v3388_v50, 2  ;;  %v331_v21 = vld [vmem:[%s3192_s15 + $0x78] sm:$0xff]  ;;  %4108 = vst [vmem:[#allocation5_spill] sm:$0xff] %v3452_v22  ;;  %4109 = vst [vmem:[#allocation6_spill] sm:$0xff] %v3455_v18  ;;  %v3465_v51 = vsel %vm2142_vm1, %v2170_v0, %v2172_v56  ;;  %v545_v48 = vsel %vm534_vm0, %v542_v39, %v544_v12 }
  0xb1   : > { %914 = vmatmul.mubr.bf16.gmra.mxu0 %v3244_v46  ;;  %v481_v46 = vshrl.u32 %v3324_v42, 16  ;;  %4110 = vst [vmem:[#allocation7_spill] sm:$0xff] %v3458_v37  ;;  %4111 = vst [vmem:[#allocation8_spill] sm:$0xff] %v3462_v32  ;;  %v433_v19 = vmul.f32 %v3363_v13, %v331_v21  ;;  %v493_v49 = vshll.u32 %v441_v44, 16  ;;  %v546_v61 = vrot.slane %v441_v44, 1 }
  0xb2   : > { %v3419_v57 = vsel %vm534_vm0, %v1167_v31, %v3401_v47  ;;  %923 = vmatprep.mubr.bf16.mxu0 %v480_v25  ;;  %v330_v31 = vld [vmem:[%s3192_s15 + $0x70] sm:$0xff]  ;;  %4112 = vst [vmem:[#allocation9_spill] sm:$0xff] %v3465_v51  ;;  %v3468_v15 = vsel %vm2142_vm1, %v2172_v56, %v2174_v3 }
  0xb3   : > { %1045 = vmatmul.mubr.bf16.gmra.mxu1 %v543_v26  ;;  %v483_v43 = vor.u32 %v481_v46, %v479_v38  ;;  %4113 = vst [vmem:[#allocation10_spill] sm:$0xff] %v3468_v15  ;;  %v432_v27 = vmul.f32 %v3365_v14, %v330_v31  ;;  %v489_v38 = vshrl.u32 %v3382_v23, 16  ;;  %v495_v60 = vrot.slane %v493_v49, 1  ;;  %v2901_v49 = vld [vmem:[%s4101_s4 + $0xe0] sm:$0xff]  }
  0xb4   : > { %1054 = vmatprep.mubr.bf16.mxu1 %v2953_v1  ;;  %v434_v14 = vmul.f32 %v3388_v50, %v332_v62  ;;  %v547_v39 = vsel %vm534_vm0, %v544_v12, %v546_v61  ;;  %v497_v26 = vshrl.u32 %v441_v44, 16  ;;  %v2906_v62 = vld [vmem:[%s4101_s4 + $0x98] sm:$0xff]  }
  0xb5   : > { %v488_v45 = vsel %vm444_vm2, %v483_v43, %v487_v8  ;;  %v442_v52 = vpack.c.bf16 %v433_v19, %v432_v27  ;;  %v491_v13 = vor.u32 %v489_v38, %v487_v8  ;;  %v2903_v38 = vld [vmem:[%s4101_s4 + $0x40] sm:$0xff]  }
  0xb6   : > { %v443_v25 = vpack.c.bf16 %v434_v14, %v434_v14  ;;  %v499_v46 = vor.u32 %v497_v26, %v495_v60  ;;  %v2910_v14 = vld [vmem:[%s4101_s4 + $0x90] sm:$0xff]   ;;  %v2916_v26 = vld [vmem:[%s4101_s4 + $0x80] sm:$0xff]  }
  0xb7   : > { %v501_v4 = vshll.u32 %v442_v52, 16  ;;  %v548_v0 = vrot.slane %v442_v52, 1  ;;  %v505_v8 = vshrl.u32 %v442_v52, 16 }
  0xb8   : > { %v509_v3 = vshll.u32 %v443_v25, 16  ;;  %v550_v21 = vrot.slane %v443_v25, 1 }
  0xb9   : > { %924 = vmatmul.mubr.bf16.gmra.mxu0 %v3271_v63  ;;  %v496_v63 = vsel %vm444_vm2, %v491_v13, %v495_v60  ;;  %v503_v56 = vrot.slane %v501_v4, 1  ;;  %v2904_v60 = vld [vmem:[%s4101_s4] sm:$0xff]   ;;  %v2909_v13 = vld [vmem:[%s4101_s4 + $0xd0] sm:$0xff]   ;;  %v2912_v4 = vld [vmem:[%s4101_s4 + $0x88] sm:$0xff]  }
  0xba   : > { %933 = vmatprep.mubr.bf16.mxu0 %v488_v45  ;;  %v511_v12 = vrot.slane %v509_v3, 1  ;;  %v551_v19 = vsel %vm534_vm0, %v548_v0, %v550_v21  ;;  %v2897_v45 = vld [vmem:[%s4101_s4 + $0xe8] sm:$0xff]  }
  0xbb   : > { %1055 = vmatmul.mubr.bf16.gmra.mxu1 %v545_v48  ;;  %v504_v50 = vsel %vm444_vm2, %v499_v46, %v503_v56  ;;  %v507_v31 = vor.u32 %v505_v8, %v503_v56  ;;  %2641 = vmatprep.subr.bf16.mxu0 %v2897_v45  ;;  %v2899_v48 = vld [vmem:[%s4101_s4 + $0x48] sm:$0xff]   ;;  %v611_v56 = vlaneseq }
  0xbc   : > { %1064 = vmatprep.mubr.bf16.mxu1 %v2953_v1  ;;  %2585 = vmatprep.subr.bf16.mxu1 %v2899_v48 }
  0xbd   : > { %v512_v43 = vsel %vm444_vm2, %v507_v31, %v511_v12 }
  0xc1   : > { %934 = vmatmul.mubr.bf16.gmra.mxu0 %v3324_v42  ;;  %v549_v42 = vsel %vm534_vm0, %v546_v61, %v548_v0  ;;  %v2905_v61 = vld [vmem:[%s4101_s4 + $0xd8] sm:$0xff]   ;;  %v612_v0 = vshrl.u32 %v611_v56, 7 }
  0xc2   : > { %943 = vmatprep.mubr.bf16.mxu0 %v496_v63  ;;  %v2911_v63 = vld [vmem:[%s4101_s4 + $0xc8] sm:$0xff]  }
  0xc3   : > { %1065 = vmatmul.mubr.bf16.gmra.mxu1 %v547_v39  ;;  %v2907_v39 = vld [vmem:[%s4101_s4 + $0x178] sm:$0xff]   ;;  %v617_v8 = vsub.s32 1, %v612_v0 }
  0xc4   : > { %1074 = vmatprep.mubr.bf16.mxu1 %v2953_v1 }
  0xc9   : > { %944 = vmatmul.mubr.bf16.gmra.mxu0 %v3382_v23  ;;  %v513_v23 = vshrl.u32 %v443_v25, 16 }
  0xca   : > { %953 = vmatprep.mubr.bf16.mxu0 %v504_v50  ;;  %v613_v50 = vsub.s32 0, %v612_v0 }
  0xcb   : > { %1075 = vmatmul.mubr.bf16.gmra.mxu1 %v549_v42  ;;  %v515_v27 = vor.u32 %v513_v23, %v511_v12  ;;  %v609_v42 = vld [vmem:[%s4100_s3] sm:$0x3] }
  0xcc   : > { %1084 = vmatprep.mubr.bf16.mxu1 %v2953_v1 }
  0xd1   : > { %954 = vmatmul.mubr.bf16.gmra.mxu0 %v441_v44  ;;  %v2898_v44 = vld [vmem:[%s4101_s4 + $0xa8] sm:$0xff]  }
  0xd2   : > { %963 = vmatprep.mubr.bf16.mxu0 %v512_v43  ;;  %2642 = vmatpush3.bf16.msra.mxu0 %v2898_v44  ;;  %v3546_v43 = vrot.slane %v609_v42, %v617_v8 }
  0xd3   : > { %1085 = vmatmul.mubr.bf16.gmra.mxu1 %v551_v19  ;;  %2643 = vmatprep.subr.bf16.mxu0 %v2901_v49 }
  0xd4   : > { %1094 = vmatprep.mubr.bf16.mxu1 %v2953_v1  ;;  %v2900_v1 = vld [vmem:[%s4101_s4 + $0x8] sm:$0xff]  }
  0xd5   : > { %2586 = vmatpush3.bf16.msra.mxu1 %v2900_v1 }
  0xd6   : > { %2587 = vmatprep.subr.bf16.mxu1 %v2903_v38 }
  0xd9   : > { %964 = vmatmul.mubr.bf16.gmra.mxu0 %v442_v52  ;;  %v2902_v52 = vld [vmem:[%s4101_s4 + $0xa0] sm:$0xff]   ;;  %2588 = vmatpush3.bf16.msra.mxu1 %v2904_v60 }
  0xda   : > { %973 = vmatprep.mubr.bf16.mxu0 %v515_v27  ;;  %2644 = vmatpush3.bf16.msra.mxu0 %v2902_v52 }
  0xdb   : > { %1095 = vmatmul.mubr.bf16.gmra.mxu1 %v550_v21  ;;  %2645 = vmatprep.subr.bf16.mxu0 %v2905_v61  ;;  %v3544_v21 = vrot.slane %v609_v42, %v613_v50 }
  0xdc   : > { %2765 = vmatprep.subr.bf16.mxu1 %v2907_v39 }
  0xde   : > { %2646 = vmatpush3.bf16.msra.mxu0 %v2906_v62 }
  0xdf   : > { %2647 = vmatprep.subr.bf16.mxu0 %v2909_v13 }
  0xe1   : > { %974 = vmatmul.mubr.bf16.gmra.mxu0 %v443_v25  ;;  %v2915_v25 = vld [vmem:[%s4101_s4 + $0xc0] sm:$0xff]  }
  0xe2   : > { %2648 = vmatpush3.bf16.msra.mxu0 %v2910_v14 }
  0xe3   : > { %2649 = vmatprep.subr.bf16.mxu0 %v2911_v63 }
  0xe6   : > { %2650 = vmatpush3.bf16.msra.mxu0 %v2912_v4 }
  0xe7   : > { %2651 = vmatprep.subr.bf16.mxu0 %v2915_v25 }
  0xea   : > { %2652 = vmatpush3.bf16.msra.mxu0 %v2916_v26 }
  0xeb   : > { %2701 = vmatprep.subr.bf16.mxu0 %v2907_v39 }
 0x15b   : > { %v1016_v46 = vpop.f32.mrf.mxu1 }
 0x15d   : > { %v1018_v3 = vpop.f32.mrf.mxu1 }
 0x15f   : > { %v1020_v12 = vpop.f32.mrf.mxu1 }
 0x161   : > { %v1022_v31 = vpop.f32.mrf.mxu1  ;;  %v895_v19 = vpop.f32.mrf.mxu0 }
 0x162   : > { %v896_v23 = vadd.f32 %v895_v19, %v3544_v21 }
 0x163   : > { %v1026_v27 = vpop.f32.mrf.mxu1  ;;  %v897_v45 = vpop.f32.mrf.mxu0 }
 0x164   : > { %v1017_v44 = vadd.f32 %v1016_v46, %v896_v23  ;;  %v898_v48 = vadd.f32 %v897_v45, %v3546_v43 }
 0x165   : > { %v1028_v1 = vpop.f32.mrf.mxu1  ;;  %v899_v49 = vpop.f32.mrf.mxu0 }
 0x166   : > { %v1019_v52 = vadd.f32 %v1018_v3, %v898_v48  ;;  %v900_v38 = vadd.f32 %v899_v49, %v3544_v21  ;;  %v1103_v61 = vmax.f32 %v1017_v44, 0.0 }
 0x167   : > { %v1030_v60 = vpop.f32.mrf.mxu1  ;;  %v901_v62 = vpop.f32.mrf.mxu0 }
 0x168   : > { %v1021_v13 = vadd.f32 %v1020_v12, %v900_v38  ;;  %v902_v14 = vadd.f32 %v901_v62, %v3546_v43  ;;  %v1104_v4 = vmax.f32 %v1019_v52, 0.0  ;;  %v1188_v46 = vmul.f32 %v3222_v33, %v1103_v61 }
 0x169   : > { %v1032_v63 = vpop.f32.mrf.mxu1  ;;  %v905_v39 = vpop.f32.mrf.mxu0 }
 0x16a   : > { %v1105_v25 = vmax.f32 %v1021_v13, 0.0  ;;  %v1023_v26 = vadd.f32 %v1022_v31, %v902_v14  ;;  %v906_v56 = vadd.f32 %v905_v39, %v3544_v21  ;;  %v1189_v45 = vmul.f32 %v3222_v33, %v1104_v4  ;;  %v3567_v14 = vld [vmem:[%s4101_s4 + $0x138] sm:$0xff]  }
 0x16b   : > { %v1036_v0 = vpop.f32.mrf.mxu1  ;;  %v907_v50 = vpop.f32.mrf.mxu0 }
 0x16c   : > { %v1190_v42 = vmul.f32 %v3225_v34, %v1105_v25  ;;  %v1106_v3 = vmax.f32 %v1023_v26, 0.0  ;;  %v1027_v8 = vadd.f32 %v1026_v27, %v906_v56  ;;  %v908_v19 = vadd.f32 %v907_v50, %v3546_v43 }
 0x16d   : > { %v1038_v12 = vpop.f32.mrf.mxu1  ;;  %v909_v23 = vpop.f32.mrf.mxu0 }
 0x16e   : > { %v3557_v44 = vpack.c.bf16 %v1190_v42, %v1188_v46  ;;  %v1191_v31 = vmul.f32 %v3225_v34, %v1106_v3  ;;  %v1029_v48 = vadd.f32 %v1028_v1, %v908_v19  ;;  %v1107_v52 = vmax.f32 %v1027_v8, 0.0  ;;  %v3572_v34 = vld [vmem:[%s4101_s4 + $0x170] sm:$0xff]  }
 0x16f   : > { %v1040_v49 = vpop.f32.mrf.mxu1  ;;  %v910_v38 = vadd.f32 %v909_v23, %v3544_v21  ;;  %v911_v61 = vpop.f32.mrf.mxu0 }
 0x170   : > { %v3561_v62 = vpack.c.bf16 %v1191_v31, %v1189_v45  ;;  %v912_v27 = vadd.f32 %v911_v61, %v3546_v43  ;;  %v1108_v33 = vmax.f32 %v1029_v48, 0.0  ;;  %v1243_v1 = vshll.u32 %v3557_v44, 16  ;;  %v3585_v45 = vld [vmem:[%s4101_s4 + $0x130] sm:$0xff]  }
 0x171   : > { %v1042_v13 = vpop.f32.mrf.mxu1  ;;  %v1031_v39 = vadd.f32 %v1030_v60, %v910_v38  ;;  %v915_v4 = vpop.f32.mrf.mxu0  ;;  %v1192_v46 = vmul.f32 %v3210_v29, %v1107_v52  ;;  %v1241_v31 = vshrl.u32 %v3557_v44, 16 }
 0x172   : > { %v1033_v25 = vadd.f32 %v1032_v63, %v912_v27  ;;  %v916_v26 = vadd.f32 %v915_v4, %v3544_v21  ;;  %1883 = vmatprep.mubr.bf16.mxu1 %v3561_v62  ;;  %v1255_v60 = vshll.u32 %v3561_v62, 16  ;;  %v1245_v3 = vrot.slane %v1243_v1, 1  ;;  %v3595_v27 = vld [vmem:[%s4101_s4 + $0x168] sm:$0xff]  }
 0x173   : > { %v1046_v56 = vpop.f32.mrf.mxu1  ;;  %v1109_v50 = vmax.f32 %v1031_v39, 0.0  ;;  %v917_v42 = vpop.f32.mrf.mxu0  ;;  %1884 = vmatmul.mubr.bf16.vlgmr.msra.gmra.mxu1 %v3557_v44  ;;  %v1193_v48 = vmul.f32 %v3210_v29, %v1108_v33 }
 0x174   : > { %v1110_v8 = vmax.f32 %v1033_v25, 0.0  ;;  %v1037_v19 = vadd.f32 %v1036_v0, %v916_v26  ;;  %v918_v23 = vadd.f32 %v917_v42, %v3546_v43  ;;  %2773 = vmatpush3.bf16.msra.mxu1 %v3567_v14  ;;  %v1253_v0 = vshrl.u32 %v3561_v62, 16 }
 0x175   : > { %v1048_v63 = vpop.f32.mrf.mxu1  ;;  %v1194_v52 = vmul.f32 %v3257_v53, %v1109_v50  ;;  %v919_v38 = vpop.f32.mrf.mxu0  ;;  %2766 = vmatprep.subr.bf16.mxu1 %v3572_v34  ;;  %v1257_v61 = vrot.slane %v1255_v60, 1  ;;  %v1246_v50 = vor.u32 %v1245_v3, %v1241_v31  ;;  %v1413_v42 = vrot.slane %v3561_v62, 1 }
 0x176   : > { %v1195_v39 = vmul.f32 %v3257_v53, %v1110_v8  ;;  %v1111_v4 = vmax.f32 %v1037_v19, 0.0  ;;  %v1039_v1 = vadd.f32 %v1038_v12, %v918_v23  ;;  %v920_v25 = vadd.f32 %v919_v38, %v3544_v21  ;;  %v3611_v12 = vld [vmem:[%s4101_s4 + $0x128] sm:$0xff]   ;;  %v3621_v8 = vld [vmem:[%s4101_s4 + $0x160] sm:$0xff]  }
 0x177   : > { %v1050_v29 = vpop.f32.mrf.mxu1  ;;  %v3599_v33 = vpack.c.bf16 %v1194_v52, %v1192_v46  ;;  %v921_v26 = vpop.f32.mrf.mxu0  ;;  %v1410_v60 = vrot.slane %v3557_v44, 1  ;;  %v1258_v53 = vor.u32 %v1257_v61, %v1253_v0 }
 0x178   : > { %v3603_v15 = vpack.c.bf16 %v1195_v39, %v1193_v48  ;;  %v1112_v51 = vmax.f32 %v1039_v1, 0.0  ;;  %v1041_v32 = vadd.f32 %v1040_v49, %v920_v25  ;;  %2774 = vmatpush3.bf16.msra.mxu1 %v3585_v45  ;;  %v1196_v46 = vmul.f32 %v3260_v54, %v1111_v4 }
 0x179   : > { %v3605_v37 = vpop.f32.mrf.mxu1  ;;  %v922_v62 = vadd.f32 %v921_v26, %v3546_v43  ;;  %v925_v3 = vpop.f32.mrf.mxu0  ;;  %v1248_v44 = vshll.u32 %v3599_v33, 16  ;;  %2767 = vmatprep.subr.bf16.mxu1 %v3595_v27  ;;  %v1264_v49 = vshrl.u32 %v3599_v33, 16  ;;  %v4114_v30 = vrot.slane %v3599_v33, 1 }
 0x17a   : > { %v1113_v19 = vmax.f32 %v1041_v32, 0.0  ;;  %v926_v23 = vadd.f32 %v925_v3, %v3544_v21  ;;  %1891 = vmatprep.mubr.bf16.mxu1 %v3603_v15  ;;  %v1260_v48 = vshll.u32 %v3603_v15, 16  ;;  %v1197_v38 = vmul.f32 %v3260_v54, %v1112_v51  ;;  %v3640_v54 = vld [vmem:[%s4101_s4 + $0x120] sm:$0xff]  }
 0x17b   : > { %v3625_v31 = vpop.f32.mrf.mxu1  ;;  %v1043_v0 = vadd.f32 %v1042_v13, %v922_v62  ;;  %v927_v61 = vpop.f32.mrf.mxu0  ;;  %1892 = vmatmul.mubr.bf16.gmra.mxu1 %v3599_v33  ;;  %v1250_v39 = vrot.slane %v1248_v44, 1  ;;  %v1414_v4 = vrot.slane %v3603_v15, 1  ;;  %v1272_v44 = vshrl.u32 %v3603_v15, 16  ;;  %v3730_v15 = vld [vmem:[%s4101_s4 + $0x148] sm:$0xff]  }
 0x17c   : > { %v1198_v32 = vmul.f32 %v3286_v10, %v1113_v19  ;;  %v1047_v1 = vadd.f32 %v1046_v56, %v926_v23  ;;  %v928_v25 = vadd.f32 %v927_v61, %v3546_v43  ;;  %v1262_v3 = vrot.slane %v1260_v48, 1  ;;  %2775 = vmatpush3.bf16.msra.mxu1 %v3611_v12  ;;  %v3648_v56 = vld [vmem:[%s4101_s4 + $0x158] sm:$0xff]  }
 0x17d   : > { %v3634_v26 = vpop.f32.mrf.mxu1  ;;  %v1114_v51 = vmax.f32 %v1043_v0, 0.0  ;;  %v929_v13 = vpop.f32.mrf.mxu0  ;;  %v1251_v62 = vsel %vm444_vm2, %v1246_v50, %v1250_v39  ;;  %2768 = vmatprep.subr.bf16.mxu1 %v3621_v8  ;;  %v3653_v19 = vsel %vm534_vm0, %v1413_v42, %v1414_v4  ;;  %v1266_v22 = vor.u32 %v1264_v49, %v1250_v39 }
 0x17e   : > { %v3655_v23 = vpack.c.bf16 %v1198_v32, %v1196_v46  ;;  %v1115_v48 = vmax.f32 %v1047_v1, 0.0  ;;  %v1049_v0 = vadd.f32 %v1048_v63, %v928_v25  ;;  %v930_v50 = vadd.f32 %v929_v13, %v3544_v21 }
 0x17f   : > { %v3658_v61 = vpop.f32.mrf.mxu1  ;;  %v1199_v52 = vmul.f32 %v3286_v10, %v1114_v51  ;;  %v931_v18 = vpop.f32.mrf.mxu0  ;;  %v1263_v24 = vsel %vm444_vm2, %v1258_v53, %v1262_v3  ;;  %v3665_v17 = vsel %vm534_vm0, %v1410_v60, %v4114_v30  ;;  %v1274_v1 = vor.u32 %v1272_v44, %v1262_v3 }
 0x180   : > { %v1116_v42 = vmax.f32 %v1049_v0, 0.0  ;;  %v1051_v46 = vadd.f32 %v1050_v29, %v930_v50  ;;  %v932_v32 = vadd.f32 %v931_v18, %v3546_v43  ;;  %1980 = vmatprep.mubr.bf16.mxu0 %v1263_v24  ;;  %2776 = vmatpush3.bf16.msra.mxu1 %v3640_v54  ;;  %v1200_v53 = vmul.f32 %v3289_v11, %v1115_v48  ;;  %v3680_v24 = vld [vmem:[%s4101_s4 + $0x118] sm:$0xff]  }
 0x181   : > { %v3668_v63 = vpop.f32.mrf.mxu1  ;;  %v3671_v10 = vpack.c.bf16 %v1199_v52, %v1197_v38  ;;  %1981 = vmatmul.mubr.bf16.vlgmr.msra.gmra.mxu0 %v1251_v62  ;;  %v935_v49 = vpop.f32.mrf.mxu0  ;;  %v1268_v39 = vshll.u32 %v3655_v23, 16  ;;  %v1280_v30 = vshrl.u32 %v3655_v23, 16  ;;  %2769 = vmatprep.subr.bf16.mxu1 %v3648_v56  ;;  %v3690_v38 = vld [vmem:[%s4101_s4 + $0x150] sm:$0xff]   ;;  %v4104_v25 = vrot.slane %v3655_v23, 1 }
 0x182   : > { %v1117_v18 = vmax.f32 %v1051_v46, 0.0  ;;  %v1053_v29 = vadd.f32 %v3605_v37, %v932_v32  ;;  %v936_v60 = vadd.f32 %v935_v49, %v3544_v21  ;;  %2702 = vmatpush3.bf16.msra.mxu0 %v3567_v14  ;;  %v1201_v3 = vmul.f32 %v3289_v11, %v1116_v42 }
 0x183   : > { %v3684_v52 = vpop.f32.mrf.mxu1  ;;  %1899 = vmatprep.mubr.bf16.mxu1 %v3671_v10  ;;  %v937_v51 = vpop.f32.mrf.mxu0  ;;  %v1276_v37 = vshll.u32 %v3671_v10, 16  ;;  %v1270_v13 = vrot.slane %v1268_v39, 1  ;;  %2703 = vmatprep.subr.bf16.mxu0 %v3572_v34  ;;  %v1418_v62 = vrot.slane %v3671_v10, 1  ;;  %v1288_v32 = vshrl.u32 %v3671_v10, 16  ;;  %v3710_v34 = vld [vmem:[%s4101_s4 + $0x110] sm:$0xff]  }
 0x184   : > { %v1202_v14 = vmul.f32 %v3317_v40, %v1117_v18  ;;  %v1118_v44 = vmax.f32 %v1053_v29, 0.0  ;;  %v1057_v48 = vadd.f32 %v3625_v31, %v936_v60  ;;  %v938_v0 = vadd.f32 %v937_v51, %v3546_v43  ;;  %1900 = vmatmul.mubr.bf16.gmra.mxu1 %v3655_v23 }
 0x185   : > { %v3702_v11 = vpop.f32.mrf.mxu1  ;;  %v939_v50 = vpop.f32.mrf.mxu0  ;;  %v1278_v42 = vrot.slane %v1276_v37, 1  ;;  %v1271_v46 = vsel %vm444_vm2, %v1266_v22, %v1270_v13  ;;  %2777 = vmatpush3.bf16.msra.mxu1 %v3680_v24  ;;  %v3717_v31 = vsel %vm534_vm0, %v1414_v4, %v1418_v62 }
 0x186   : > { %v3719_v49 = vpack.c.bf16 %v1202_v14, %v1200_v53  ;;  %v1203_v22 = vmul.f32 %v3317_v40, %v1118_v44  ;;  %v1119_v39 = vmax.f32 %v1057_v48, 0.0  ;;  %v1059_v18 = vadd.f32 %v3634_v26, %v938_v0  ;;  %2770 = vmatprep.subr.bf16.mxu1 %v3690_v38  ;;  %2704 = vmatpush3.bf16.msra.mxu0 %v3585_v45 }
 0x187   : > { %v3723_v29 = vpop.f32.mrf.mxu1  ;;  %v940_v4 = vadd.f32 %v939_v50, %v3544_v21  ;;  %v941_v53 = vpop.f32.mrf.mxu0  ;;  %v1279_v60 = vsel %vm444_vm2, %v1274_v1, %v1278_v42  ;;  %v1282_v40 = vor.u32 %v1280_v30, %v1270_v13  ;;  %2705 = vmatprep.subr.bf16.mxu0 %v3595_v27  ;;  %v4115_v26 = vrot.slane %v3599_v33, 1 }
 0x188   : > { %v3742_v45 = vpack.c.bf16 %v1203_v22, %v1201_v3  ;;  %v1120_v37 = vmax.f32 %v1059_v18, 0.0  ;;  %v942_v14 = vadd.f32 %v941_v53, %v3546_v43  ;;  %1988 = vmatprep.mubr.bf16.mxu0 %v1279_v60  ;;  %v1290_v48 = vor.u32 %v1288_v32, %v1278_v42  ;;  %v3755_v3 = vld [vmem:[%s4101_s4 + $0x108] sm:$0xff]  }
 0x189   : > { %v3740_v51 = vsel %vm534_vm0, %v4115_v26, %v4104_v25  ;;  %v3745_v44 = vpop.f32.mrf.mxu1  ;;  %v1204_v1 = vmul.f32 %v3342_v58, %v1119_v39  ;;  %v1061_v27 = vadd.f32 %v3658_v61, %v940_v4  ;;  %1989 = vmatmul.mubr.bf16.gmra.mxu0 %v1271_v46  ;;  %v945_v30 = vpop.f32.mrf.mxu0  ;;  %v1284_v33 = vshll.u32 %v3719_v49, 16  ;;  %2778 = vmatpush3.bf16.msra.mxu1 %v3710_v34  ;;  %v3767_v46 = vld [vmem:[%s4101_s4 + $0x140] sm:$0xff]  }
 0x18a   : > { %v1296_v13 = vshrl.u32 %v3719_v49, 16  ;;  %v1063_v0 = vadd.f32 %v3668_v63, %v942_v14  ;;  %v946_v50 = vadd.f32 %v945_v30, %v3544_v21  ;;  %1907 = vmatprep.mubr.bf16.mxu1 %v3742_v45  ;;  %v1292_v42 = vshll.u32 %v3742_v45, 16  ;;  %2771 = vmatprep.subr.bf16.mxu1 %v3730_v15 }
 0x18b   : > { %v3760_v61 = vpop.f32.mrf.mxu1  ;;  %v1205_v22 = vmul.f32 %v3342_v58, %v1120_v37  ;;  %v1121_v63 = vmax.f32 %v1061_v27, 0.0  ;;  %v947_v39 = vpop.f32.mrf.mxu0  ;;  %v1286_v18 = vrot.slane %v1284_v33, 1  ;;  %2706 = vmatpush3.bf16.msra.mxu0 %v3611_v12  ;;  %v1422_v4 = vrot.slane %v3742_v45, 1 }
 0x18c   : > { %v1122_v53 = vmax.f32 %v1063_v0, 0.0  ;;  %v1067_v60 = vadd.f32 %v3684_v52, %v946_v50  ;;  %v948_v26 = vadd.f32 %v947_v39, %v3546_v43  ;;  %1908 = vmatmul.mubr.bf16.gmra.mxu1 %v3719_v49  ;;  %v1294_v30 = vrot.slane %v1292_v42, 1  ;;  %2707 = vmatprep.subr.bf16.mxu0 %v3621_v8  ;;  %v3784_v52 = vld [vmem:[%s4101_s4 + $0x100] sm:$0xff]  }
 0x18d   : > { %v1078_v14 = vpop.f32.mrf.mxu1  ;;  %v1206_v58 = vmul.f32 %v3345_v59, %v1121_v63  ;;  %v949_v37 = vpop.f32.mrf.mxu0  ;;  %v1287_v27 = vsel %vm444_vm2, %v1282_v40, %v1286_v18  ;;  %v1304_v12 = vshrl.u32 %v3742_v45, 16  ;;  %2779 = vmatpush3.bf16.msra.mxu1 %v3755_v3  ;;  %v3791_v8 = vsel %vm534_vm0, %v1418_v62, %v1422_v4 }
 0x18e   : > { %v1207_v33 = vmul.f32 %v3345_v59, %v1122_v53  ;;  %v1123_v0 = vmax.f32 %v1067_v60, 0.0  ;;  %v1069_v40 = vadd.f32 %v3702_v11, %v948_v26  ;;  %v950_v50 = vadd.f32 %v949_v37, %v3544_v21  ;;  %2772 = vmatprep.subr.bf16.mxu1 %v3767_v46 }
 0x18f   : > { %v1080_v42 = vpop.f32.mrf.mxu1  ;;  %v3797_v63 = vpack.c.bf16 %v1206_v58, %v1204_v1  ;;  %v951_v39 = vpop.f32.mrf.mxu0  ;;  %v1295_v25 = vsel %vm444_vm2, %v1290_v48, %v1294_v30  ;;  %v1298_v32 = vor.u32 %v1296_v13, %v1286_v18  ;;  %2708 = vmatpush3.bf16.msra.mxu0 %v3640_v54  ;;  %v4116_v10 = vrot.slane %v3719_v49, 1 }
 0x190   : > { %v4117_v59 = vrot.slane %v3655_v23, 1  ;;  %v3808_v11 = vpack.c.bf16 %v1207_v33, %v1205_v22  ;;  %v1124_v53 = vmax.f32 %v1069_v40, 0.0  ;;  %v1071_v60 = vadd.f32 %v3723_v29, %v950_v50  ;;  %1996 = vmatprep.mubr.bf16.mxu0 %v1295_v25  ;;  %2709 = vmatprep.subr.bf16.mxu0 %v3648_v56 }
 0x191   : > { %v1082_v1 = vpop.f32.mrf.mxu1  ;;  %v1306_v26 = vor.u32 %v1304_v12, %v1294_v30  ;;  %v1208_v48 = vmul.f32 %v3368_v9, %v1123_v0  ;;  %v952_v54 = vadd.f32 %v951_v39, %v3546_v43  ;;  %1997 = vmatmul.mubr.bf16.gmra.mxu0 %v1287_v27  ;;  %v955_v13 = vpop.f32.mrf.mxu0  ;;  %v1300_v23 = vshll.u32 %v3797_v63, 16  ;;  %2780 = vmatpush3.bf16.msra.mxu1 %v3784_v52 }
 0x192   : > { %v3806_v62 = vsel %vm534_vm0, %v4117_v59, %v4116_v10  ;;  %v1312_v18 = vshrl.u32 %v3797_v63, 16  ;;  %v1125_v22 = vmax.f32 %v1071_v60, 0.0  ;;  %v956_v29 = vadd.f32 %v955_v13, %v3544_v21  ;;  %1915 = vmatprep.mubr.bf16.mxu1 %v3808_v11 }
 0x193   : > { %v1086_v25 = vpop.f32.mrf.mxu1  ;;  %v1308_v56 = vshll.u32 %v3808_v11, 16  ;;  %v1424_v30 = vrot.slane %v3797_v63, 1  ;;  %v1209_v58 = vmul.f32 %v3368_v9, %v1124_v53  ;;  %v1073_v37 = vadd.f32 %v3745_v44, %v952_v54  ;;  %v957_v27 = vpop.f32.mrf.mxu0  ;;  %2710 = vmatpush3.bf16.msra.mxu0 %v3680_v24 }
 0x194   : > { %v1302_v12 = vrot.slane %v1300_v23, 1  ;;  %v1426_v33 = vrot.slane %v3808_v11, 1  ;;  %v1210_v0 = vmul.f32 %v3371_v16, %v1125_v22  ;;  %v1077_v40 = vadd.f32 %v3760_v61, %v956_v29  ;;  %1916 = vmatmul.mubr.bf16.gmra.mxu1 %v3797_v63  ;;  %2711 = vmatprep.subr.bf16.mxu0 %v3690_v38 }
 0x195   : > { %v958_v50 = vadd.f32 %v957_v27, %v3546_v43  ;;  %v1088_v39 = vpop.f32.mrf.mxu1  ;;  %v1310_v10 = vrot.slane %v1308_v56, 1  ;;  %v1126_v9 = vmax.f32 %v1073_v37, 0.0  ;;  %v959_v44 = vpop.f32.mrf.mxu0  ;;  %v1320_v24 = vshrl.u32 %v3808_v11, 16 }
 0x196   : > { %v1303_v59 = vsel %vm444_vm2, %v1298_v32, %v1302_v12  ;;  %v3835_v53 = vsel %vm534_vm0, %v1422_v4, %v1426_v33  ;;  %v3837_v61 = vpack.c.bf16 %v1210_v0, %v1208_v48  ;;  %v1127_v60 = vmax.f32 %v1077_v40, 0.0 }
 0x197   : > { %v1079_v54 = vadd.f32 %v1078_v14, %v958_v50  ;;  %v960_v13 = vadd.f32 %v959_v44, %v3544_v21  ;;  %v1090_v23 = vpop.f32.mrf.mxu1  ;;  %v1211_v38 = vmul.f32 %v3371_v16, %v1126_v9  ;;  %v961_v22 = vpop.f32.mrf.mxu0  ;;  %v1311_v29 = vsel %vm444_vm2, %v1306_v26, %v1310_v10  ;;  %2712 = vmatpush3.bf16.msra.mxu0 %v3710_v34 }
 0x198   : > { %v1314_v32 = vor.u32 %v1312_v18, %v1302_v12  ;;  %v4118_v45 = vrot.slane %v3719_v49, 1  ;;  %v962_v14 = vadd.f32 %v961_v22, %v3546_v43  ;;  %2004 = vmatprep.mubr.bf16.mxu0 %v1311_v29  ;;  %v1322_v56 = vor.u32 %v1320_v24, %v1310_v10  ;;  %2713 = vmatprep.subr.bf16.mxu0 %v3730_v15 }
 0x199   : > { %v1081_v11 = vadd.f32 %v1080_v42, %v960_v13  ;;  %v1092_v48 = vpop.f32.mrf.mxu1  ;;  %v3852_v16 = vpack.c.bf16 %v1211_v38, %v1209_v58  ;;  %v1212_v26 = vmul.f32 %v3392_v28, %v1127_v60  ;;  %v1128_v34 = vmax.f32 %v1079_v54, 0.0  ;;  %2005 = vmatmul.mubr.bf16.gmra.mxu0 %v1303_v59  ;;  %v965_v18 = vpop.f32.mrf.mxu0 }
 0x19a   : > { %v3848_v4 = vsel %vm534_vm0, %v4118_v45, %v1424_v30  ;;  %v1316_v49 = vshll.u32 %v3837_v61, 16  ;;  %v1083_v27 = vadd.f32 %v1082_v1, %v962_v14  ;;  %v966_v42 = vadd.f32 %v965_v18, %v3544_v21 }
 0x19b   : > { %v1129_v37 = vmax.f32 %v1081_v11, 0.0  ;;  %v1096_v12 = vpop.f32.mrf.mxu1  ;;  %v1328_v0 = vshrl.u32 %v3837_v61, 16  ;;  %1923 = vmatprep.mubr.bf16.mxu1 %v3852_v16  ;;  %v967_v40 = vpop.f32.mrf.mxu0  ;;  %v1324_v15 = vshll.u32 %v3852_v16, 16  ;;  %2714 = vmatpush3.bf16.msra.mxu0 %v3755_v3  ;;  %v1430_v50 = vrot.slane %v3852_v16, 1 }
 0x19c   : > { %v1318_v58 = vrot.slane %v1316_v49, 1  ;;  %v1428_v10 = vrot.slane %v3837_v61, 1  ;;  %v1130_v1 = vmax.f32 %v1083_v27, 0.0  ;;  %v1087_v44 = vadd.f32 %v1086_v25, %v966_v42  ;;  %1924 = vmatmul.mubr.bf16.gmra.mxu1 %v3837_v61  ;;  %2715 = vmatprep.subr.bf16.mxu0 %v3767_v46 }
 0x19d   : > { %v1214_v9 = vmul.f32 %v3395_v41, %v1129_v37  ;;  %v968_v59 = vadd.f32 %v967_v40, %v3546_v43  ;;  %v1098_v24 = vpop.f32.mrf.mxu1  ;;  %v1213_v60 = vmul.f32 %v3392_v28, %v1128_v34  ;;  %v969_v54 = vpop.f32.mrf.mxu0  ;;  %v1326_v13 = vrot.slane %v1324_v15, 1 }
 0x19e   : > { %v1319_v3 = vsel %vm444_vm2, %v1314_v32, %v1318_v58  ;;  %v3870_v38 = vsel %vm534_vm0, %v1426_v33, %v1430_v50  ;;  %v1215_v25 = vmul.f32 %v3395_v41, %v1130_v1  ;;  %v1131_v29 = vmax.f32 %v1087_v44, 0.0 }
 0x19f   : > { %v3872_v22 = vpack.c.bf16 %v1214_v9, %v1212_v26  ;;  %v1089_v45 = vadd.f32 %v1088_v39, %v968_v59  ;;  %v1100_v11 = vpop.f32.mrf.mxu1  ;;  %v970_v14 = vadd.f32 %v969_v54, %v3544_v21  ;;  %v971_v18 = vpop.f32.mrf.mxu0  ;;  %v1327_v46 = vsel %vm444_vm2, %v1322_v56, %v1326_v13  ;;  %2716 = vmatpush3.bf16.msra.mxu0 %v3784_v52 }
 0x1a0   : > { %v1336_v28 = vshrl.u32 %v3852_v16, 16  ;;  %v3884_v33 = vsel %vm534_vm0, %v1424_v30, %v1428_v10  ;;  %v3886_v41 = vpack.c.bf16 %v1215_v25, %v1213_v60  ;;  %v972_v39 = vadd.f32 %v971_v18, %v3546_v43  ;;  %2012 = vmatprep.mubr.bf16.mxu0 %v1327_v46 }
 0x1a1   : > { %v1101_v32 = vpop.f32.mrf.mxu1  ;;  %v1330_v26 = vor.u32 %v1328_v0, %v1318_v58  ;;  %v1132_v34 = vmax.f32 %v1089_v45, 0.0  ;;  %v1091_v56 = vadd.f32 %v1090_v23, %v970_v14  ;;  %2013 = vmatmul.mubr.bf16.gmra.mxu0 %v1319_v3  ;;  %v975_v16 = vpop.f32.mrf.mxu0  ;;  %v1332_v52 = vshll.u32 %v3872_v22, 16 }
 0x1a2   : > { %v1338_v49 = vor.u32 %v1336_v28, %v1326_v13  ;;  %v1216_v37 = vmul.f32 %v3410_v6, %v1131_v29  ;;  %v1093_v63 = vadd.f32 %v1092_v48, %v972_v39  ;;  %v976_v30 = vadd.f32 %v975_v16, %v3544_v21  ;;  %1931 = vmatprep.mubr.bf16.mxu1 %v3886_v41 }
 0x1a3   : > { %v1340_v27 = vshll.u32 %v3886_v41, 16  ;;  %v1133_v42 = vmax.f32 %v1091_v56, 0.0  ;;  %v977_v40 = vpop.f32.mrf.mxu0  ;;  %v1334_v15 = vrot.slane %v1332_v52, 1  ;;  %v1434_v0 = vrot.slane %v3886_v41, 1 }
 0x1a4   : > { %v1432_v23 = vrot.slane %v3872_v22, 1  ;;  %v1134_v58 = vmax.f32 %v1093_v63, 0.0  ;;  %v1097_v9 = vadd.f32 %v1096_v12, %v976_v30  ;;  %v978_v1 = vadd.f32 %v977_v40, %v3546_v43  ;;  %1932 = vmatmul.mubr.bf16.gmra.mxu1 %v3872_v22 }
 0x1a5   : > { %v1342_v48 = vrot.slane %v1340_v27, 1  ;;  %v1217_v21 = vmul.f32 %v3410_v6, %v1132_v34  ;;  %v1218_v44 = vmul.f32 %v3419_v57, %v1133_v42  ;;  %v979_v59 = vpop.f32.mrf.mxu0  ;;  %v1335_v60 = vsel %vm444_vm2, %v1330_v26, %v1334_v15 }
 0x1a6   : > { %v1435_v54 = vsel %vm534_vm0, %v1430_v50, %v1434_v0  ;;  %v1219_v13 = vmul.f32 %v3419_v57, %v1134_v58  ;;  %v1135_v3 = vmax.f32 %v1097_v9, 0.0  ;;  %v1099_v25 = vadd.f32 %v1098_v24, %v978_v1 }
 0x1a7   : > { %v1343_v12 = vsel %vm444_vm2, %v1338_v49, %v1342_v48  ;;  %v1236_v29 = vpack.c.bf16 %v1218_v44, %v1216_v37  ;;  %v980_v43 = vpop.f32.mrf.mxu0  ;;  %v1344_v45 = vshrl.u32 %v3872_v22, 16  ;;  %v1433_v6 = vsel %vm534_vm0, %v1428_v10, %v1432_v23 }
 0x1a8   : > { %2020 = vmatprep.mubr.bf16.mxu0 %v1343_v12  ;;  %v1237_v11 = vpack.c.bf16 %v1219_v13, %v1217_v21  ;;  %v1220_v14 = vmul.f32 %v3401_v47, %v1135_v3  ;;  %v1136_v18 = vmax.f32 %v1099_v25, 0.0  ;;  %v1352_v50 = vshrl.u32 %v3886_v41, 16 }
 0x1a9   : > { %2021 = vmatmul.mubr.bf16.gmra.mxu0 %v1335_v60  ;;  %v1346_v57 = vor.u32 %v1344_v45, %v1334_v15  ;;  %v1348_v24 = vshll.u32 %v1236_v29, 16  ;;  %v1436_v46 = vrot.slane %v1236_v29, 1  ;;  %v1360_v61 = vshrl.u32 %v1236_v29, 16 }
 0x1aa   : > { %v1238_v28 = vpack.c.bf16 %v1220_v14, %v1220_v14  ;;  %v1221_v39 = vmul.f32 %v3401_v47, %v1136_v18  ;;  %1939 = vmatprep.mubr.bf16.mxu1 %v1237_v11  ;;  %v1354_v32 = vor.u32 %v1352_v50, %v1342_v48  ;;  %v1356_v22 = vshll.u32 %v1237_v11, 16 }
 0x1ab   : > { %v1350_v26 = vrot.slane %v1348_v24, 1  ;;  %v1438_v34 = vrot.slane %v1237_v11, 1  ;;  %v1437_v10 = vsel %vm534_vm0, %v1432_v23, %v1436_v46  ;;  %v1368_v37 = vshrl.u32 %v1237_v11, 16 }
 0x1ac   : > { %v1239_v56 = vpack.c.bf16 %v1221_v39, %v1221_v39  ;;  %1940 = vmatmul.mubr.bf16.gmra.mxu1 %v1236_v29  ;;  %v1358_v16 = vrot.slane %v1356_v22, 1  ;;  %v1364_v49 = vshll.u32 %v1238_v28, 16  ;;  %v1440_v41 = vrot.slane %v1238_v28, 1 }
 0x1ad   : > { %2093 = vmatprep.mubr.bf16.mxu1 %v3791_v8  ;;  %v1351_v52 = vsel %vm444_vm2, %v1346_v57, %v1350_v26  ;;  %v1439_v47 = vsel %vm534_vm0, %v1434_v0, %v1438_v34  ;;  %v1362_v27 = vor.u32 %v1360_v61, %v1350_v26 }
 0x1ae   : > { %v1359_v63 = vsel %vm444_vm2, %v1354_v32, %v1358_v16  ;;  %v1372_v30 = vshll.u32 %v1239_v56, 16  ;;  %v1366_v42 = vrot.slane %v1364_v49, 1  ;;  %v1442_v40 = vrot.slane %v1239_v56, 1 }
 0x1af   : > { %2028 = vmatprep.mubr.bf16.mxu0 %v1359_v63  ;;  %v1441_v15 = vsel %vm534_vm0, %v1436_v46, %v1440_v41  ;;  %v1370_v23 = vor.u32 %v1368_v37, %v1358_v16 }
 0x1b0   : > { %v1374_v58 = vrot.slane %v1372_v30, 1  ;;  %v1367_v9 = vsel %vm444_vm2, %v1362_v27, %v1366_v42  ;;  %v1443_v8 = vsel %vm534_vm0, %v1438_v34, %v1442_v40 }
 0x1b1   : > { %2029 = vmatmul.mubr.bf16.gmra.mxu0 %v1351_v52 }
 0x1b2   : > { %v1375_v1 = vsel %vm444_vm2, %v1370_v23, %v1374_v58 }
 0x1b3   : > { %2036 = vmatprep.mubr.bf16.mxu0 %v1375_v1 }
 0x1b4   : > { %2094 = vmatmul.mubr.bf16.vlgmr.msra.gmra.mxu1 %v3806_v62 }
 0x1b5   : > { %2101 = vmatprep.mubr.bf16.mxu1 %v3835_v53 }
 0x1b9   : > { %2037 = vmatmul.mubr.bf16.gmra.mxu0 %v1367_v9 }
 0x1ba   : > { %2077 = vmatprep.mubr.bf16.mxu0 %v3653_v19 }
 0x1bc   : > { %2102 = vmatmul.mubr.bf16.gmra.mxu1 %v3848_v4 }
 0x1bd   : > { %2109 = vmatprep.mubr.bf16.mxu1 %v3870_v38 }
 0x1c1   : > { %2078 = vmatmul.mubr.bf16.vlgmr.msra.gmra.mxu0 %v3665_v17 }
 0x1c2   : > { %2085 = vmatprep.mubr.bf16.mxu0 %v3717_v31 }
 0x1c4   : > { %2110 = vmatmul.mubr.bf16.gmra.mxu1 %v3884_v33  ;;  %v3932_v33 = vld [vmem:[%s4102_s5] ss:$0 sm:$0xff] }
 0x1c5   : > { %2117 = vmatprep.mubr.bf16.mxu1 %v1435_v54 }
 0x1c9   : > { %2086 = vmatmul.mubr.bf16.gmra.mxu0 %v3740_v51 }
 0x1cc   : > { %2118 = vmatmul.mubr.bf16.gmra.mxu1 %v1433_v6 }
 0x1cd   : > { %2125 = vmatprep.mubr.bf16.mxu1 %v1439_v47 }
 0x1d4   : > { %2126 = vmatmul.mubr.bf16.gmra.mxu1 %v1437_v10 }
 0x1d5   : > { %2133 = vmatprep.mubr.bf16.mxu1 %v1443_v8 }
 0x1dc   : > { %2134 = vmatmul.mubr.bf16.gmra.mxu1 %v1441_v15 }
 0x233   : > { %v2589_v62 = vpop.f32.mrf.mxu1 }
 0x235   : > { %v2590_v19 = vpop.f32.mrf.mxu1 }
 0x236   : > { %v2591_v53 = vadd.f32 %v2590_v19, %v2589_v62 }
 0x237   : > { %v2592_v4 = vpop.f32.mrf.mxu1 }
 0x238   : > { %v1886_v54 = vadd.f32 %v2591_v53, %v3932_v33 }
 0x239   : > { %v2593_v0 = vpop.f32.mrf.mxu1 }
 0x23a   : > { %v2594_v38 = vadd.f32 %v2593_v0, %v2592_v4 }
 0x23b   : > { %v2595_v48 = vpop.f32.mrf.mxu1 }
 0x23c   : > { %v1889_v45 = vadd.f32 %v2594_v38, %v3932_v33 }
 0x23d   : > { %v2596_v17 = vpop.f32.mrf.mxu1 }
 0x23e   : > { %v2597_v21 = vadd.f32 %v2596_v17, %v2595_v48 }
 0x23f   : > { %v2598_v31 = vpop.f32.mrf.mxu1 }
 0x240   : > { %v1894_v24 = vadd.f32 %v2597_v21, %v3932_v33 }
 0x241   : > { %v2653_v51 = vpop.f32.mrf.mxu0  ;;  %v2599_v44 = vpop.f32.mrf.mxu1 }
 0x242   : > { %v2600_v59 = vadd.f32 %v2599_v44, %v2598_v31 }
 0x243   : > { %v2654_v60 = vpop.f32.mrf.mxu0 }
 0x244   : > { %v2655_v13 = vadd.f32 %v2654_v60, %v2653_v51  ;;  %v2601_v3 = vpop.f32.mrf.mxu1  ;;  %v1897_v61 = vadd.f32 %v2600_v59, %v3932_v33 }
 0x245   : > { %v2656_v25 = vpop.f32.mrf.mxu0 }
 0x246   : > { %v3935_v12 = vadd.f32 %v2655_v13, %v1886_v54  ;;  %v2602_v29 = vpop.f32.mrf.mxu1 }
 0x247   : > { %v2657_v43 = vpop.f32.mrf.mxu0 }
 0x248   : > { %v2658_v6 = vadd.f32 %v2657_v43, %v2656_v25  ;;  %v2604_v11 = vpop.f32.mrf.mxu1  ;;  %v2603_v43 = vadd.f32 %v2602_v29, %v2601_v3 }
 0x249   : > { %v2659_v14 = vpop.f32.mrf.mxu0 }
 0x24a   : > { %v3938_v18 = vadd.f32 %v2658_v6, %v1889_v45  ;;  %v2605_v50 = vpop.f32.mrf.mxu1 }
 0x24b   : > { %v2660_v57 = vpop.f32.mrf.mxu0 }
 0x24c   : > { %v2661_v46 = vadd.f32 %v2660_v57, %v2659_v14  ;;  %v2607_v28 = vpop.f32.mrf.mxu1  ;;  %v2606_v14 = vadd.f32 %v2605_v50, %v2604_v11 }
 0x24d   : > { %v2662_v39 = vpop.f32.mrf.mxu0 }
 0x24e   : > { %v3941_v32 = vadd.f32 %v2661_v46, %v1894_v24  ;;  %v2608_v22 = vpop.f32.mrf.mxu1 }
 0x24f   : > { %v2663_v26 = vpop.f32.mrf.mxu0  ;;  %v2609_v29 = vadd.f32 %v2608_v22, %v2607_v28 }
 0x250   : > { %v2664_v34 = vadd.f32 %v2663_v26, %v2662_v39  ;;  %v2610_v10 = vpop.f32.mrf.mxu1  ;;  %v1902_v39 = vadd.f32 %v2603_v43, %v3932_v33 }
 0x251   : > { %v2665_v56 = vpop.f32.mrf.mxu0 }
 0x252   : > { %v3944_v16 = vadd.f32 %v2664_v34, %v1897_v61  ;;  %v2611_v49 = vpop.f32.mrf.mxu1 }
 0x253   : > { %v2666_v41 = vpop.f32.mrf.mxu0  ;;  %v2612_v43 = vadd.f32 %v2611_v49, %v2610_v10 }
 0x254   : > { %v3946_v52 = vpop.f32.mrf.mxu1  ;;  %v2667_v57 = vadd.f32 %v2666_v41, %v2665_v56 }
 0x255   : > { %v2668_v37 = vpop.f32.mrf.mxu0  ;;  %v1913_v49 = vadd.f32 %v2612_v43, %v3932_v33 }
 0x256   : > { %v3948_v47 = vpop.f32.mrf.mxu1 }
 0x257   : > { %v2669_v63 = vpop.f32.mrf.mxu0 }
 0x258   : > { %v3950_v30 = vpop.f32.mrf.mxu1  ;;  %v2670_v26 = vadd.f32 %v2669_v63, %v2668_v37 }
 0x259   : > { %v2671_v27 = vpop.f32.mrf.mxu0 }
 0x25a   : > { %v3952_v42 = vpop.f32.mrf.mxu1 }
 0x25b   : > { %v2672_v40 = vpop.f32.mrf.mxu0 }
 0x25c   : > { %v3954_v15 = vpop.f32.mrf.mxu1  ;;  %v2673_v37 = vadd.f32 %v2672_v40, %v2671_v27 }
 0x25d   : > { %v2674_v23 = vpop.f32.mrf.mxu0 }
 0x25e   : > { %v3956_v58 = vpop.f32.mrf.mxu1 }
 0x25f   : > { %v2675_v9 = vpop.f32.mrf.mxu0 }
 0x260   : > { %v3958_v8 = vpop.f32.mrf.mxu1 }
 0x261   : > { %v3960_v1 = vpop.f32.mrf.mxu0 }
 0x262   : > { %v3962_v62 = vpop.f32.mrf.mxu1 }
 0x263   : > { %v3964_v19 = vpop.f32.mrf.mxu0 }
 0x264   : > { %v3966_v53 = vpop.f32.mrf.mxu1 }
 0x265   : > { %v3968_v4 = vpop.f32.mrf.mxu0 }
 0x266   : > { %v3970_v0 = vpop.f32.mrf.mxu1 }
 0x267   : > { %v3972_v38 = vpop.f32.mrf.mxu0 }
 0x268   : > { %v3974_v48 = vpop.f32.mrf.mxu1  ;;  %v2682_v43 = vadd.f32 %v3972_v38, %v3968_v4 }
 0x269   : > { %v3976_v17 = vpop.f32.mrf.mxu0 }
 0x26a   : > { %v3978_v21 = vpop.f32.mrf.mxu1 }
 0x26b   : > { %v3980_v31 = vpop.f32.mrf.mxu0 }
 0x26c   : > { %v3982_v51 = vpop.f32.mrf.mxu1 }
 0x26d   : > { %4119 = vst [vmem:[#allocation11_spill] sm:$0xff] %v3982_v51  ;;  %v3984_v44 = vpop.f32.mrf.mxu0 }
 0x26e   : > { %v3986_v59 = vpop.f32.mrf.mxu1 }
 0x26f   : > { %4120 = vst [vmem:[#allocation12_spill] sm:$0xff] %v3986_v59  ;;  %v3988_v60 = vpop.f32.mrf.mxu0  ;;  %v1905_v59 = vadd.f32 %v2606_v14, %v3932_v33 }
 0x270   : > { %v3990_v54 = vpop.f32.mrf.mxu1 }
 0x271   : > { %4121 = vst [vmem:[#allocation13_spill] sm:$0xff] %v3990_v54  ;;  %v3992_v13 = vpop.f32.mrf.mxu0  ;;  %v2002_v11 = vadd.f32 %v2670_v26, %v1905_v59 }
 0x272   : > { %v3994_v25 = vpop.f32.mrf.mxu1 }
 0x273   : > { %4122 = vst [vmem:[#allocation14_spill] sm:$0xff] %v3994_v25  ;;  %v3996_v45 = vpop.f32.mrf.mxu0  ;;  %v1999_v25 = vadd.f32 %v2667_v57, %v1902_v39  ;;  %v2676_v57 = vadd.f32 %v2675_v9, %v2674_v23 }
 0x274   : > { %v2729_v6 = vpop.f32.mrf.mxu1 }
 0x275   : > { %v3998_v24 = vpop.f32.mrf.mxu0 }
 0x276   : > { %4123 = vst [vmem:[#allocation15_spill] sm:$0xff] %v3998_v24  ;;  %v2730_v46 = vpop.f32.mrf.mxu1 }
 0x277   : > { %v2731_v61 = vadd.f32 %v2730_v46, %v2729_v6  ;;  %v4001_v34 = vpop.f32.mrf.mxu0  ;;  %v1910_v46 = vadd.f32 %v2609_v29, %v3932_v33  ;;  %v2679_v29 = vadd.f32 %v3964_v19, %v3960_v1 }
 0x278   : > { %v2732_v54 = vpop.f32.mrf.mxu1 }
 0x279   : > { %v4004_v3 = vpop.f32.mrf.mxu0  ;;  %v2096_v50 = vadd.f32 %v2731_v61, %v1999_v25  ;;  %v2007_v27 = vadd.f32 %v2673_v37, %v1910_v46  ;;  %v2618_v61 = vadd.f32 %v3952_v42, %v3950_v30 }
 0x27a   : > { %v2733_v51 = vpop.f32.mrf.mxu1 }
 0x27b   : > { %v2734_v56 = vadd.f32 %v2733_v51, %v2732_v54  ;;  %v4006_v41 = vpop.f32.mrf.mxu0  ;;  %v2196_v39 = vmul.f32 %v3422_v55, %v2096_v50  ;;  %v2615_v55 = vadd.f32 %v3948_v47, %v3946_v52 }
 0x27c   : > { %v2735_v24 = vpop.f32.mrf.mxu1 }
 0x27d   : > { %v2099_v63 = vadd.f32 %v2734_v56, %v2002_v11  ;;  %v4009_v6 = vpop.f32.mrf.mxu0  ;;  %v1918_v56 = vadd.f32 %v2615_v55, %v3932_v33 }
 0x27e   : > { %v2736_v14 = vpop.f32.mrf.mxu1 }
 0x27f   : > { %v2197_v28 = vmul.f32 %v3428_v2, %v2099_v63  ;;  %v2737_v22 = vadd.f32 %v2736_v14, %v2735_v24  ;;  %v4014_v59 = vpop.f32.mrf.mxu0  ;;  %v2010_v2 = vadd.f32 %v2676_v57, %v1913_v49  ;;  %v1921_v14 = vadd.f32 %v2618_v61, %v3932_v33 }
 0x280   : > { %v2738_v10 = vpop.f32.mrf.mxu1  ;;  %v2015_v57 = vadd.f32 %v2679_v29, %v1918_v56 }
 0x281   : > { %v2539_v40 = vpack.c.bf16 %v2197_v28, %v2196_v39  ;;  %v2717_v51 = vpop.f32.mrf.mxu0  ;;  %v2104_v9 = vadd.f32 %v2737_v22, %v2007_v27  ;;  %v2621_v28 = vadd.f32 %v3956_v58, %v3954_v15 }
 0x282   : > { %v2739_v23 = vpop.f32.mrf.mxu1 }
 0x283   : > { %2567 = vst [vmem:[%s4019_s9 + $0x10] sm:$0xff] %v2539_v40   ;;  %v2740_v54 = vadd.f32 %v2739_v23, %v2738_v10  ;;  %v2718_v25 = vpop.f32.mrf.mxu0  ;;  %v2198_v37 = vmul.f32 %v3433_v5, %v2104_v9  ;;  %v2018_v5 = vadd.f32 %v2682_v43, %v1921_v14  ;;  %v2624_v40 = vadd.f32 %v3962_v62, %v3958_v8  ;;  %v4129_v14 = vld [vmem:[#allocation6_spill] sm:$0xff] }
 0x284   : > { %v2719_v24 = vadd.f32 %v2718_v25, %v2717_v51  ;;  %v2741_v26 = vpop.f32.mrf.mxu1  ;;  %v2685_v51 = vadd.f32 %v3980_v31, %v3976_v17  ;;  %v4125_v17 = vld [vmem:[#allocation2_spill] sm:$0xff] }
 0x285   : > { %v2107_v11 = vadd.f32 %v2740_v54, %v2010_v2  ;;  %v2720_v50 = vpop.f32.mrf.mxu0  ;;  %v4124_v54 = vld [vmem:[#allocation3_spill] sm:$0xff]  ;;  %v1929_v61 = vadd.f32 %v2624_v40, %v3932_v33 }
 0x286   : > { %v2080_v52 = vadd.f32 %v2719_v24, %v3935_v12  ;;  %v2742_v47 = vpop.f32.mrf.mxu1 }
 0x287   : > { %v2199_v63 = vmul.f32 %v3436_v7, %v2107_v11  ;;  %v2743_v46 = vadd.f32 %v2742_v47, %v2741_v26  ;;  %v2721_v30 = vpop.f32.mrf.mxu0  ;;  %v2627_v11 = vadd.f32 %v3970_v0, %v3966_v53 }
 0x288   : > { %v2192_v42 = vmul.f32 %v3228_v35, %v2080_v52  ;;  %v2722_v1 = vadd.f32 %v2721_v30, %v2720_v50  ;;  %v2744_v19 = vpop.f32.mrf.mxu1  ;;  %v4126_v52 = vld [vmem:[#allocation5_spill] sm:$0xff]  ;;  %v4127_v30 = vld [vmem:[#allocation15_spill] sm:$0xff] }
 0x289   : > { %v2544_v39 = vpack.c.bf16 %v2199_v63, %v2198_v37  ;;  %v2723_v12 = vpop.f32.mrf.mxu0  ;;  %v2112_v7 = vadd.f32 %v2743_v46, %v2015_v57  ;;  %v2630_v37 = vadd.f32 %v3978_v21, %v3974_v48  ;;  %v2691_v63 = vadd.f32 %v3996_v45, %v3992_v13  ;;  %v4130_v45 = vld [vmem:[#allocation11_spill] sm:$0xff] }
 0x28a   : > { %v2083_v4 = vadd.f32 %v2722_v1, %v3938_v18  ;;  %v2745_v38 = vpop.f32.mrf.mxu1  ;;  %v1926_v18 = vadd.f32 %v2621_v28, %v3932_v33  ;;  %v1934_v53 = vadd.f32 %v2627_v11, %v3932_v33  ;;  %v4128_v1 = vld [vmem:[#allocation4_spill] sm:$0xff] }
 0x28b   : > { %2568 = vst [vmem:[%s4019_s9 + $0x18] sm:$0xff] %v2544_v39   ;;  %v2746_v22 = vadd.f32 %v2745_v38, %v2744_v19  ;;  %v2724_v10 = vpop.f32.mrf.mxu0  ;;  %v2200_v9 = vmul.f32 %v3440_v20, %v2112_v7  ;;  %v1937_v48 = vadd.f32 %v2630_v37, %v3932_v33  ;;  %v4131_v28 = vld [vmem:[#allocation12_spill] sm:$0xff] }
 0x28c   : > { %v2193_v35 = vmul.f32 %v3231_v36, %v2083_v4  ;;  %v2725_v49 = vadd.f32 %v2724_v10, %v2723_v12  ;;  %v2747_v27 = vpop.f32.mrf.mxu1  ;;  %v2688_v36 = vadd.f32 %v3988_v60, %v3984_v44  ;;  %v2023_v29 = vadd.f32 %v2685_v51, %v1926_v18  ;;  %v4132_v10 = vld [vmem:[#allocation13_spill] sm:$0xff]  ;;  %v4134_v18 = vld [vmem:[#allocation7_spill] sm:$0xff] }
 0x28d   : > { %v2115_v15 = vadd.f32 %v2746_v22, %v2018_v5  ;;  %v2726_v58 = vpop.f32.mrf.mxu0  ;;  %v2031_v21 = vadd.f32 %v2691_v63, %v1934_v53  ;;  %v2633_v4 = vadd.f32 %v4131_v28, %v4130_v45 }
 0x28e   : > { %v2529_v55 = vpack.c.bf16 %v2193_v35, %v2192_v42  ;;  %v2088_v23 = vadd.f32 %v2725_v49, %v3941_v32  ;;  %v2748_v2 = vpop.f32.mrf.mxu1  ;;  %v2026_v20 = vadd.f32 %v2688_v36, %v1929_v61  ;;  %v2694_v42 = vadd.f32 %v4001_v34, %v4127_v30  ;;  %v4133_v35 = vld [vmem:[#allocation14_spill] sm:$0xff] }
 0x28f   : > { %v2201_v25 = vmul.f32 %v4124_v54, %v2115_v15  ;;  %v2749_v8 = vadd.f32 %v2748_v2, %v2747_v27  ;;  %v2727_v62 = vpop.f32.mrf.mxu0  ;;  %v2636_v49 = vadd.f32 %v4133_v35, %v4132_v10  ;;  %v2697_v27 = vadd.f32 %v4006_v41, %v4004_v3 }
 0x290   : > { %2530 = vst [vmem:[%s4019_s9] sm:$0xff] %v2529_v55   ;;  %v2194_v31 = vmul.f32 %v4125_v17, %v2088_v23  ;;  %v2728_v24 = vadd.f32 %v2727_v62, %v2726_v58  ;;  %v2750_v26 = vpop.f32.mrf.mxu1  ;;  %v2034_v5 = vadd.f32 %v2694_v42, %v1937_v48  ;;  %v1942_v51 = vadd.f32 %v2633_v4, %v3932_v33  ;;  %v4135_v23 = vld [vmem:[#allocation8_spill] sm:$0xff] }
 0x291   : > { %v2549_v32 = vpack.c.bf16 %v2201_v25, %v2200_v9  ;;  %v2120_v50 = vadd.f32 %v2749_v8, %v2023_v29  ;;  %v2700_v58 = vadd.f32 %v4014_v59, %v4009_v6  ;;  %v1945_v54 = vadd.f32 %v2636_v49, %v3932_v33  ;;  %v4137_v6 = vld [vmem:[#allocation10_spill] sm:$0xff] }
 0x292   : > { %v2091_v44 = vadd.f32 %v2728_v24, %v3944_v16  ;;  %v2751_v60 = vpop.f32.mrf.mxu1  ;;  %v2039_v25 = vadd.f32 %v2697_v27, %v1942_v51  ;;  %v4136_v24 = vld [vmem:[#allocation9_spill] sm:$0xff] }
 0x293   : > { %2569 = vst [vmem:[%s4019_s9 + $0x20] sm:$0xff] %v2549_v32   ;;  %v2752_v56 = vadd.f32 %v2751_v60, %v2750_v26  ;;  %v2202_v19 = vmul.f32 %v4128_v1, %v2120_v50  ;;  %v2042_v3 = vadd.f32 %v2700_v58, %v1945_v54 }
 0x294   : > { %v2195_v47 = vmul.f32 %v4126_v52, %v2091_v44  ;;  %v2753_v43 = vpop.f32.mrf.mxu1 }
 0x295   : > { %v2123_v46 = vadd.f32 %v2752_v56, %v2026_v20 }
 0x296   : > { %v2534_v16 = vpack.c.bf16 %v2195_v47, %v2194_v31  ;;  %v2754_v0 = vpop.f32.mrf.mxu1 }
 0x297   : > { %v2203_v57 = vmul.f32 %v4129_v14, %v2123_v46  ;;  %v2755_v39 = vadd.f32 %v2754_v0, %v2753_v43 }
 0x298   : > { %2566 = vst [vmem:[%s4019_s9 + $0x8] sm:$0xff] %v2534_v16   ;;  %v2756_v12 = vpop.f32.mrf.mxu1 }
 0x299   : > { %v2554_v13 = vpack.c.bf16 %v2203_v57, %v2202_v19  ;;  %v2128_v7 = vadd.f32 %v2755_v39, %v2031_v21 }
 0x29a   : > { %v2757_v38 = vpop.f32.mrf.mxu1 }
 0x29b   : > { %2570 = vst [vmem:[%s4019_s9 + $0x28] sm:$0xff] %v2554_v13   ;;  %v2758_v22 = vadd.f32 %v2757_v38, %v2756_v12  ;;  %v2204_v55 = vmul.f32 %v4134_v18, %v2128_v7 }
 0x29c   : > { %v2759_v34 = vpop.f32.mrf.mxu1 }
 0x29d   : > { %v2131_v40 = vadd.f32 %v2758_v22, %v2034_v5 }
 0x29e   : > { %v2760_v15 = vpop.f32.mrf.mxu1 }
 0x29f   : > { %v2205_v2 = vmul.f32 %v4135_v23, %v2131_v40  ;;  %v2761_v36 = vadd.f32 %v2760_v15, %v2759_v34 }
 0x2a0   : > { %v2762_v9 = vpop.f32.mrf.mxu1 }
 0x2a1   : > { %v2559_v8 = vpack.c.bf16 %v2205_v2, %v2204_v55  ;;  %v2136_v41 = vadd.f32 %v2761_v36, %v2039_v25 }
 0x2a2   : > { %v2763_v62 = vpop.f32.mrf.mxu1 }
 0x2a3   : > { %2571 = vst [vmem:[%s4019_s9 + $0x30] sm:$0xff] %v2559_v8   ;;  %v2764_v17 = vadd.f32 %v2763_v62, %v2762_v9  ;;  %v2206_v26 = vmul.f32 %v4136_v24, %v2136_v41 }
 0x2a5   : > { %v2139_v31 = vadd.f32 %v2764_v17, %v2042_v3 }
 0x2a7   : > { %v2207_v59 = vmul.f32 %v4137_v6, %v2139_v31 }
 0x2a9   : > { %v2564_v61 = vpack.c.bf16 %v2207_v59, %v2206_v26 }
 0x2ab   : > { %2572 = vst [vmem:[%s4019_s9 + $0x38] sm:$0xff] %v2564_v61  }
 0x2ac PF: > { %s16_s23 = sadd.s32 1, %s2951_s23   ;;  %s4138_s21 = smov %s2947_s22 }
 0x2ad   : > { %p13_p5 = scmp.ge.s32.totalorder %s16_s23, 4   ;;  %s4139_s22 = smov %s4141_s24 }
 0x2af   :  { %15 = sbr.rel (!%p13_p5) target bundleno = 2 (0x2), region = 79 }

</bundles_post_ra>
